<compile_context>
chip_gen: v7x
topology: tpu7x:2x2x1
jax: 0.10.0
libtpu: 0.0.40
codegen_flags: <defaults>
</compile_context>

<pallas_src>
import functools
import math

import jax
import jax.numpy as jnp
from jax import lax
from jax.experimental import pallas as pl
from jax.experimental.pallas import tpu as pltpu

LN_EPS = 1e-5


def _layernorm(x, gamma, beta):
    # Matches the PyTorch LayerNorm module: biased variance, eps inside sqrt.
    mean = jnp.mean(x, axis=-1, keepdims=True)
    var = jnp.mean((x - mean) ** 2, axis=-1, keepdims=True)
    return (x - mean) * lax.rsqrt(var + jnp.float32(LN_EPS)) * gamma + beta


def attn_block_kernel(x_ref, g1_ref, b1_ref, wq_ref, wk_ref, wv_ref, wo_ref,
                      bo_ref, o_ref, *, num_heads):
    # x_ref: (1, S, E) fp32; weights (E, E) bf16; bo/(ln params) (1, E) fp32.
    x = x_ref[0]                       # (S, E)
    S, E = x.shape
    Dh = E // num_heads

    xn = _layernorm(x, g1_ref[...], b1_ref[...])
    xb = xn.astype(jnp.bfloat16)

    # QKV projections: bf16 operands, fp32 accumulation (MXU-native).
    q = jnp.dot(xb, wq_ref[...], preferred_element_type=jnp.float32)
    k = jnp.dot(xb, wk_ref[...], preferred_element_type=jnp.float32)
    v = jnp.dot(xb, wv_ref[...], preferred_element_type=jnp.float32)

    scale = jnp.float32(1.0 / math.sqrt(Dh))
    row = lax.broadcasted_iota(jnp.int32, (S, S), 0)
    col = lax.broadcasted_iota(jnp.int32, (S, S), 1)
    causal = col > row                 # True = masked (future position)

    # Per-head attention; the out-projection is folded into the head loop so
    # no concatenate is needed: ctx @ Wo == sum_h ctx_h @ Wo[h*Dh:(h+1)*Dh, :].
    acc = jnp.zeros((S, E), jnp.float32)
    for h in range(num_heads):
        qh = q[:, h * Dh:(h + 1) * Dh]            # (S, Dh)
        kh = k[:, h * Dh:(h + 1) * Dh]
        vh = v[:, h * Dh:(h + 1) * Dh]
        s = jnp.dot(qh, kh.T, preferred_element_type=jnp.float32) * scale
        s = jnp.where(causal, jnp.float32(-1e30), s)
        s = s - jnp.max(s, axis=-1, keepdims=True)
        p = jnp.exp(s)
        p = p / jnp.sum(p, axis=-1, keepdims=True)
        ctx = jnp.dot(p, vh, preferred_element_type=jnp.float32)     # (S, Dh)
        wo_h = wo_ref[pl.ds(h * Dh, Dh), :]                          # bf16 (Dh, E)
        acc = acc + jnp.dot(ctx.astype(jnp.bfloat16), wo_h,
                            preferred_element_type=jnp.float32)

    # out_proj bias + residual (drop_shortcut is identity).
    o_ref[0] = (x + acc + bo_ref[...]).astype(o_ref.dtype)


def ffn_block_kernel(y_ref, g2_ref, s2_ref, w1_ref, b1_ref, w2_ref, b2_ref, o_ref):
    # y_ref/o_ref: (TM, E) fp32; w1 (E, H) bf16; w2 (H, E) bf16; biases fp32.
    y = y_ref[...]
    xn = _layernorm(y, g2_ref[...], s2_ref[...])

    h = jnp.dot(xn.astype(jnp.bfloat16), w1_ref[...],
                preferred_element_type=jnp.float32) + b1_ref[...]

    # GELU (tanh approximation), fp32, matching the PyTorch GELU module.
    c = jnp.float32(math.sqrt(2.0 / math.pi))
    g = 0.5 * h * (1.0 + jnp.tanh(c * (h + 0.044715 * (h * h * h))))

    out = jnp.dot(g.astype(jnp.bfloat16), w2_ref[...],
                  preferred_element_type=jnp.float32) + b2_ref[...]

    # Residual add (drop_shortcut is identity).
    o_ref[...] = (y + out).astype(o_ref.dtype)


def transformer_block(x, params, *, num_heads):
    """x: (B, S, E) fp32 -> (B, S, E) fp32.  Forward pass of TransformerBlock."""
    B, S, E = x.shape
    H = params["w1"].shape[1]
    f32, bf16 = jnp.float32, jnp.bfloat16

    # Weights in bf16 (fp32 accumulation inside the kernels); 2-D biases/LN params.
    wq = params["wq"].astype(bf16)
    wk = params["wk"].astype(bf16)
    wv = params["wv"].astype(bf16)
    wo = params["wo"].astype(bf16)
    w1 = params["w1"].astype(bf16)
    w2 = params["w2"].astype(bf16)
    ln1_g = params["ln1_g"].reshape(1, E).astype(f32)
    ln1_b = params["ln1_b"].reshape(1, E).astype(f32)
    ln2_g = params["ln2_g"].reshape(1, E).astype(f32)
    ln2_b = params["ln2_b"].reshape(1, E).astype(f32)
    bo = params["bo"].reshape(1, E).astype(f32)
    b1 = params["b1"].reshape(1, H).astype(f32)
    b2 = params["b2"].reshape(1, E).astype(f32)

    cparams = pltpu.CompilerParams(
        dimension_semantics=("parallel",),
        vmem_limit_bytes=64 * 1024 * 1024,
    )

    # ---- Kernel 1: LN1 + causal MHA + out-proj + residual, grid over batch ----
    y = pl.pallas_call(
        functools.partial(attn_block_kernel, num_heads=num_heads),
        out_shape=jax.ShapeDtypeStruct((B, S, E), x.dtype),
        grid_spec=pltpu.PrefetchScalarGridSpec(
            num_scalar_prefetch=0,
            grid=(B,),
            in_specs=[
                pl.BlockSpec((1, S, E), lambda b: (b, 0, 0)),   # x
                pl.BlockSpec((1, E), lambda b: (0, 0)),         # ln1 scale
                pl.BlockSpec((1, E), lambda b: (0, 0)),         # ln1 shift
                pl.BlockSpec((E, E), lambda b: (0, 0)),         # Wq
                pl.BlockSpec((E, E), lambda b: (0, 0)),         # Wk
                pl.BlockSpec((E, E), lambda b: (0, 0)),         # Wv
                pl.BlockSpec((E, E), lambda b: (0, 0)),         # Wo
                pl.BlockSpec((1, E), lambda b: (0, 0)),         # bo
            ],
            out_specs=pl.BlockSpec((1, S, E), lambda b: (b, 0, 0)),
        ),
        compiler_params=cparams,
    )(x, ln1_g, ln1_b, wq, wk, wv, wo, bo)

    # ---- Kernel 2: LN2 + MLP (GELU) + residual, tiled over tokens M = B*S ----
    M = B * S
    TM = min(256, M)                    # token tile; multiple of 8, tune per chip
    y2d = y.reshape(M, E)

    out2d = pl.pallas_call(
        ffn_block_kernel,
        out_shape=jax.ShapeDtypeStruct((M, E), x.dtype),
        grid_spec=pltpu.PrefetchScalarGridSpec(
            num_scalar_prefetch=0,
            grid=(pl.cdiv(M, TM),),
            in_specs=[
                pl.BlockSpec((TM, E), lambda i: (i, 0)),        # activations (streamed)
                pl.BlockSpec((1, E), lambda i: (0, 0)),         # ln2 scale
                pl.BlockSpec((1, E), lambda i: (0, 0)),         # ln2 shift
                pl.BlockSpec((E, H), lambda i: (0, 0)),         # W1 (resident)
                pl.BlockSpec((1, H), lambda i: (0, 0)),         # b1
                pl.BlockSpec((H, E), lambda i: (0, 0)),         # W2 (resident)
                pl.BlockSpec((1, E), lambda i: (0, 0)),         # b2
            ],
            out_specs=pl.BlockSpec((TM, E), lambda i: (i, 0)),
        ),
        compiler_params=cparams,
    )(y2d, ln2_g, ln2_b, w1, b1, w2, b2)

    return out2d.reshape(B, S, E)


# ----------------------- pure-JAX fp32 reference -----------------------
def reference_transformer_block(x, p, *, num_heads):
    B, S, E = x.shape
    Dh = E // num_heads

    def ln(x, g, b):
        mean = x.mean(-1, keepdims=True)
        var = ((x - mean) ** 2).mean(-1, keepdims=True)
        return g * ((x - mean) / jnp.sqrt(var + LN_EPS)) + b

    shortcut = x
    xn = ln(x, p["ln1_g"], p["ln1_b"])
    q = xn @ p["wq"]
    k = xn @ p["wk"]
    v = xn @ p["wv"]
    q = q.reshape(B, S, num_heads, Dh).transpose(0, 2, 1, 3)
    k = k.reshape(B, S, num_heads, Dh).transpose(0, 2, 1, 3)
    v = v.reshape(B, S, num_heads, Dh).transpose(0, 2, 1, 3)
    scores = q @ jnp.swapaxes(k, -1, -2)
    mask = jnp.triu(jnp.ones((S, S), dtype=bool), k=1)
    scores = jnp.where(mask, -jnp.inf, scores)
    w = jax.nn.softmax(scores / math.sqrt(Dh), axis=-1)
    ctx = (w @ v).transpose(0, 2, 1, 3).reshape(B, S, E)
    x = shortcut + ctx @ p["wo"] + p["bo"]

    shortcut = x
    xn = ln(x, p["ln2_g"], p["ln2_b"])
    h = xn @ p["w1"] + p["b1"]
    c = math.sqrt(2.0 / math.pi)
    g = 0.5 * h * (1.0 + jnp.tanh(c * (h + 0.044715 * h ** 3)))
    return shortcut + g @ p["w2"] + p["b2"]


if __name__ == "__main__":
    # Small config: emb_dim=128 (lane-dense), hidden=512, 4 heads, seq=16, batch=2.
    cfg = dict(emb_dim=128, n_heads=4, context_length=16, drop_rate=0.0, qkv_bias=False)
    batch, seq = 2, cfg["context_length"]
    E = cfg["emb_dim"]
    H = 4 * E

    key = jax.random.PRNGKey(0)
    ks = jax.random.split(key, 14)
    x = jax.random.normal(ks[0], (batch, seq, E), dtype=jnp.float32)
    params = {
        "ln1_g": 1.0 + 0.1 * jax.random.normal(ks[1], (E,), dtype=jnp.float32),
        "ln1_b": 0.05 * jax.random.normal(ks[2], (E,), dtype=jnp.float32),
        "wq": 0.02 * jax.random.normal(ks[3], (E, E), dtype=jnp.float32),
        "wk": 0.02 * jax.random.normal(ks[4], (E, E), dtype=jnp.float32),
        "wv": 0.02 * jax.random.normal(ks[5], (E, E), dtype=jnp.float32),
        "wo": 0.02 * jax.random.normal(ks[6], (E, E), dtype=jnp.float32),
        "bo": 0.01 * jax.random.normal(ks[7], (E,), dtype=jnp.float32),
        "ln2_g": 1.0 + 0.1 * jax.random.normal(ks[8], (E,), dtype=jnp.float32),
        "ln2_b": 0.05 * jax.random.normal(ks[9], (E,), dtype=jnp.float32),
        "w1": 0.02 * jax.random.normal(ks[10], (E, H), dtype=jnp.float32),
        "b1": 0.01 * jax.random.normal(ks[11], (H,), dtype=jnp.float32),
        "w2": 0.02 * jax.random.normal(ks[12], (H, E), dtype=jnp.float32),
        "b2": 0.01 * jax.random.normal(ks[13], (E,), dtype=jnp.float32),
    }

    out = transformer_block(x, params, num_heads=cfg["n_heads"])
    out = jax.block_until_ready(out)

    ref = reference_transformer_block(x, params, num_heads=cfg["n_heads"])
    assert out.shape == (batch, seq, E)
    # bf16 matmul operands with fp32 accumulation -> relaxed tolerance vs fp32 reference.
    err = float(jnp.max(jnp.abs(out - ref)))
    assert jnp.allclose(out, ref, atol=1e-2, rtol=1e-2), f"max abs err = {err}"

    print("KERNEL_OK")
</pallas_src>

<mosaic_0001>
module attributes {stable_mosaic.version = 11 : i64} {
  func.func @attn_block_kernel(%arg0: i32, %arg1: memref<1x16x128xf32, #tpu.memory_space<vmem>>, %arg2: memref<1x128xf32, #tpu.memory_space<vmem>>, %arg3: memref<1x128xf32, #tpu.memory_space<vmem>>, %arg4: memref<128x128xbf16, #tpu.memory_space<vmem>>, %arg5: memref<128x128xbf16, #tpu.memory_space<vmem>>, %arg6: memref<128x128xbf16, #tpu.memory_space<vmem>>, %arg7: memref<128x128xbf16, #tpu.memory_space<vmem>>, %arg8: memref<1x128xf32, #tpu.memory_space<vmem>>, %arg9: memref<1x16x128xf32, #tpu.memory_space<vmem>>) attributes {dimension_semantics = [#tpu.dimension_semantics<parallel>], iteration_bounds = array<i64: 2>, scalar_prefetch = 0 : i64, scratch_operands = 0 : i64, tpu.core_type = #tpu.core_type<tc>, window_params = [{transform_indices = @transform_0, window_bounds = array<i64: 1, 16, 128>}, {pipeline_mode = #tpu.pipeline_mode<synchronous>, transform_indices = @transform_1, window_bounds = array<i64: 1, 128>}, {pipeline_mode = #tpu.pipeline_mode<synchronous>, transform_indices = @transform_2, window_bounds = array<i64: 1, 128>}, {pipeline_mode = #tpu.pipeline_mode<synchronous>, transform_indices = @transform_3, window_bounds = array<i64: 128, 128>}, {pipeline_mode = #tpu.pipeline_mode<synchronous>, transform_indices = @transform_4, window_bounds = array<i64: 128, 128>}, {pipeline_mode = #tpu.pipeline_mode<synchronous>, transform_indices = @transform_5, window_bounds = array<i64: 128, 128>}, {pipeline_mode = #tpu.pipeline_mode<synchronous>, transform_indices = @transform_6, window_bounds = array<i64: 128, 128>}, {pipeline_mode = #tpu.pipeline_mode<synchronous>, transform_indices = @transform_7, window_bounds = array<i64: 1, 128>}, {transform_indices = @transform_8, window_bounds = array<i64: 1, 16, 128>}]} {
    %c0 = arith.constant 0 : index
    %c0_0 = arith.constant 0 : index
    %c0_1 = arith.constant 0 : index
    %0 = vector.load %arg1[%c0, %c0_0, %c0_1] : memref<1x16x128xf32, #tpu.memory_space<vmem>>, vector<1x16x128xf32>
    %1 = vector.shape_cast %0 : vector<1x16x128xf32> to vector<16x128xf32>
    %c0_2 = arith.constant 0 : index
    %c0_3 = arith.constant 0 : index
    %2 = vector.load %arg2[%c0_2, %c0_3] : memref<1x128xf32, #tpu.memory_space<vmem>>, vector<1x128xf32>
    %c0_4 = arith.constant 0 : index
    %c0_5 = arith.constant 0 : index
    %3 = vector.load %arg3[%c0_4, %c0_5] : memref<1x128xf32, #tpu.memory_space<vmem>>, vector<1x128xf32>
    %cst = arith.constant dense<0.000000e+00> : vector<16xf32>
    %4 = vector.multi_reduction <add>, %1, %cst [1] : vector<16x128xf32> to vector<16xf32>
    %5 = vector.shape_cast %4 : vector<16xf32> to vector<16x1xf32>
    %cst_6 = arith.constant 1.280000e+02 : f32
    %6 = vector.broadcast %cst_6 : f32 to vector<16x1xf32>
    %7 = arith.divf %5, %6 : vector<16x1xf32>
    %8 = vector.broadcast %7 : vector<16x1xf32> to vector<16x128xf32>
    %9 = arith.subf %1, %8 : vector<16x128xf32>
    %10 = arith.mulf %9, %9 : vector<16x128xf32>
    %cst_7 = arith.constant dense<0.000000e+00> : vector<16xf32>
    %11 = vector.multi_reduction <add>, %10, %cst_7 [1] : vector<16x128xf32> to vector<16xf32>
    %12 = vector.shape_cast %11 : vector<16xf32> to vector<16x1xf32>
    %cst_8 = arith.constant 1.280000e+02 : f32
    %13 = vector.broadcast %cst_8 : f32 to vector<16x1xf32>
    %14 = arith.divf %12, %13 : vector<16x1xf32>
    %15 = vector.broadcast %7 : vector<16x1xf32> to vector<16x128xf32>
    %16 = arith.subf %1, %15 : vector<16x128xf32>
    %cst_9 = arith.constant 9.99999974E-6 : f32
    %17 = vector.broadcast %cst_9 : f32 to vector<16x1xf32>
    %18 = arith.addf %14, %17 : vector<16x1xf32>
    %19 = math.rsqrt %18 : vector<16x1xf32>
    %20 = vector.broadcast %19 : vector<16x1xf32> to vector<16x128xf32>
    %21 = arith.mulf %16, %20 : vector<16x128xf32>
    %22 = vector.broadcast %2 : vector<1x128xf32> to vector<16x128xf32>
    %23 = arith.mulf %21, %22 : vector<16x128xf32>
    %24 = vector.broadcast %3 : vector<1x128xf32> to vector<16x128xf32>
    %25 = arith.addf %23, %24 : vector<16x128xf32>
    %26 = arith.truncf %25 : vector<16x128xf32> to vector<16x128xbf16>
    %c0_10 = arith.constant 0 : index
    %c0_11 = arith.constant 0 : index
    %27 = vector.load %arg4[%c0_10, %c0_11] : memref<128x128xbf16, #tpu.memory_space<vmem>>, vector<128x128xbf16>
    %cst_12 = arith.constant dense<0.000000e+00> : vector<16x128xf32>
    %28 = tpu.matmul %26, %27, %cst_12 {dimension_numbers = #tpu.dot_dimension_numbers<[1], [0], [0], [1], [0, 0, 1, 1], [], []>} : vector<16x128xbf16>, vector<128x128xbf16>, vector<16x128xf32> -> vector<16x128xf32>
    %c0_13 = arith.constant 0 : index
    %c0_14 = arith.constant 0 : index
    %29 = vector.load %arg5[%c0_13, %c0_14] : memref<128x128xbf16, #tpu.memory_space<vmem>>, vector<128x128xbf16>
    %cst_15 = arith.constant dense<0.000000e+00> : vector<16x128xf32>
    %30 = tpu.matmul %26, %29, %cst_15 {dimension_numbers = #tpu.dot_dimension_numbers<[1], [0], [0], [1], [0, 0, 1, 1], [], []>} : vector<16x128xbf16>, vector<128x128xbf16>, vector<16x128xf32> -> vector<16x128xf32>
    %c0_16 = arith.constant 0 : index
    %c0_17 = arith.constant 0 : index
    %31 = vector.load %arg6[%c0_16, %c0_17] : memref<128x128xbf16, #tpu.memory_space<vmem>>, vector<128x128xbf16>
    %cst_18 = arith.constant dense<0.000000e+00> : vector<16x128xf32>
    %32 = tpu.matmul %26, %31, %cst_18 {dimension_numbers = #tpu.dot_dimension_numbers<[1], [0], [0], [1], [0, 0, 1, 1], [], []>} : vector<16x128xbf16>, vector<128x128xbf16>, vector<16x128xf32> -> vector<16x128xf32>
    %33 = tpu.iota {dimensions = array<i32: 0>} : vector<16x16xi32>
    %34 = tpu.iota {dimensions = array<i32: 1>} : vector<16x16xi32>
    %35 = arith.cmpi sgt, %34, %33 : vector<16x16xi32>
    %cst_19 = arith.constant 0.000000e+00 : f32
    %36 = vector.broadcast %cst_19 : f32 to vector<16x128xf32>
    %37 = vector.extract_strided_slice %28 {offsets = [0, 0], sizes = [16, 32], strides = [1, 1]} : vector<16x128xf32> to vector<16x32xf32>
    %38 = vector.extract_strided_slice %30 {offsets = [0, 0], sizes = [16, 32], strides = [1, 1]} : vector<16x128xf32> to vector<16x32xf32>
    %39 = vector.extract_strided_slice %32 {offsets = [0, 0], sizes = [16, 32], strides = [1, 1]} : vector<16x128xf32> to vector<16x32xf32>
    %40 = tpu.transpose %38, [1, 0] : vector<16x32xf32> -> vector<32x16xf32>
    %cst_20 = arith.constant dense<0.000000e+00> : vector<16x16xf32>
    %41 = tpu.matmul %37, %40, %cst_20 {dimension_numbers = #tpu.dot_dimension_numbers<[1], [0], [0], [1], [0, 0, 1, 1], [], []>} : vector<16x32xf32>, vector<32x16xf32>, vector<16x16xf32> -> vector<16x16xf32>
    %cst_21 = arith.constant 0.176776692 : f32
    %42 = vector.broadcast %cst_21 : f32 to vector<16x16xf32>
    %43 = arith.mulf %41, %42 : vector<16x16xf32>
    %cst_22 = arith.constant -1.000000e+30 : f32
    %44 = vector.broadcast %cst_22 : f32 to vector<16x16xf32>
    %45 = arith.select %35, %44, %43 : vector<16x16xi1>, vector<16x16xf32>
    %cst_23 = arith.constant dense<0xFF800000> : vector<16xf32>
    %46 = vector.multi_reduction <maximumf>, %45, %cst_23 [1] : vector<16x16xf32> to vector<16xf32>
    %47 = vector.shape_cast %46 : vector<16xf32> to vector<16x1xf32>
    %48 = vector.broadcast %47 : vector<16x1xf32> to vector<16x16xf32>
    %49 = arith.subf %45, %48 : vector<16x16xf32>
    %50 = math.exp %49 : vector<16x16xf32>
    %cst_24 = arith.constant dense<0.000000e+00> : vector<16xf32>
    %51 = vector.multi_reduction <add>, %50, %cst_24 [1] : vector<16x16xf32> to vector<16xf32>
    %52 = vector.shape_cast %51 : vector<16xf32> to vector<16x1xf32>
    %53 = vector.broadcast %52 : vector<16x1xf32> to vector<16x16xf32>
    %54 = arith.divf %50, %53 : vector<16x16xf32>
    %cst_25 = arith.constant dense<0.000000e+00> : vector<16x32xf32>
    %55 = tpu.matmul %54, %39, %cst_25 {dimension_numbers = #tpu.dot_dimension_numbers<[1], [0], [0], [1], [0, 0, 1, 1], [], []>} : vector<16x16xf32>, vector<16x32xf32>, vector<16x32xf32> -> vector<16x32xf32>
    %c0_26 = arith.constant 0 : index
    %c0_27 = arith.constant 0 : index
    %56 = vector.load %arg7[%c0_26, %c0_27] : memref<128x128xbf16, #tpu.memory_space<vmem>>, vector<32x128xbf16>
    %57 = arith.truncf %55 : vector<16x32xf32> to vector<16x32xbf16>
    %cst_28 = arith.constant dense<0.000000e+00> : vector<16x128xf32>
    %58 = tpu.matmul %57, %56, %cst_28 {dimension_numbers = #tpu.dot_dimension_numbers<[1], [0], [0], [1], [0, 0, 1, 1], [], []>} : vector<16x32xbf16>, vector<32x128xbf16>, vector<16x128xf32> -> vector<16x128xf32>
    %59 = arith.addf %36, %58 : vector<16x128xf32>
    %60 = vector.extract_strided_slice %28 {offsets = [0, 32], sizes = [16, 32], strides = [1, 1]} : vector<16x128xf32> to vector<16x32xf32>
    %61 = vector.extract_strided_slice %30 {offsets = [0, 32], sizes = [16, 32], strides = [1, 1]} : vector<16x128xf32> to vector<16x32xf32>
    %62 = vector.extract_strided_slice %32 {offsets = [0, 32], sizes = [16, 32], strides = [1, 1]} : vector<16x128xf32> to vector<16x32xf32>
    %63 = tpu.transpose %61, [1, 0] : vector<16x32xf32> -> vector<32x16xf32>
    %cst_29 = arith.constant dense<0.000000e+00> : vector<16x16xf32>
    %64 = tpu.matmul %60, %63, %cst_29 {dimension_numbers = #tpu.dot_dimension_numbers<[1], [0], [0], [1], [0, 0, 1, 1], [], []>} : vector<16x32xf32>, vector<32x16xf32>, vector<16x16xf32> -> vector<16x16xf32>
    %cst_30 = arith.constant 0.176776692 : f32
    %65 = vector.broadcast %cst_30 : f32 to vector<16x16xf32>
    %66 = arith.mulf %64, %65 : vector<16x16xf32>
    %cst_31 = arith.constant -1.000000e+30 : f32
    %67 = vector.broadcast %cst_31 : f32 to vector<16x16xf32>
    %68 = arith.select %35, %67, %66 : vector<16x16xi1>, vector<16x16xf32>
    %cst_32 = arith.constant dense<0xFF800000> : vector<16xf32>
    %69 = vector.multi_reduction <maximumf>, %68, %cst_32 [1] : vector<16x16xf32> to vector<16xf32>
    %70 = vector.shape_cast %69 : vector<16xf32> to vector<16x1xf32>
    %71 = vector.broadcast %70 : vector<16x1xf32> to vector<16x16xf32>
    %72 = arith.subf %68, %71 : vector<16x16xf32>
    %73 = math.exp %72 : vector<16x16xf32>
    %cst_33 = arith.constant dense<0.000000e+00> : vector<16xf32>
    %74 = vector.multi_reduction <add>, %73, %cst_33 [1] : vector<16x16xf32> to vector<16xf32>
    %75 = vector.shape_cast %74 : vector<16xf32> to vector<16x1xf32>
    %76 = vector.broadcast %75 : vector<16x1xf32> to vector<16x16xf32>
    %77 = arith.divf %73, %76 : vector<16x16xf32>
    %cst_34 = arith.constant dense<0.000000e+00> : vector<16x32xf32>
    %78 = tpu.matmul %77, %62, %cst_34 {dimension_numbers = #tpu.dot_dimension_numbers<[1], [0], [0], [1], [0, 0, 1, 1], [], []>} : vector<16x16xf32>, vector<16x32xf32>, vector<16x32xf32> -> vector<16x32xf32>
    %c32 = arith.constant 32 : index
    %c0_35 = arith.constant 0 : index
    %79 = vector.load %arg7[%c32, %c0_35] : memref<128x128xbf16, #tpu.memory_space<vmem>>, vector<32x128xbf16>
    %80 = arith.truncf %78 : vector<16x32xf32> to vector<16x32xbf16>
    %cst_36 = arith.constant dense<0.000000e+00> : vector<16x128xf32>
    %81 = tpu.matmul %80, %79, %cst_36 {dimension_numbers = #tpu.dot_dimension_numbers<[1], [0], [0], [1], [0, 0, 1, 1], [], []>} : vector<16x32xbf16>, vector<32x128xbf16>, vector<16x128xf32> -> vector<16x128xf32>
    %82 = arith.addf %59, %81 : vector<16x128xf32>
    %83 = vector.extract_strided_slice %28 {offsets = [0, 64], sizes = [16, 32], strides = [1, 1]} : vector<16x128xf32> to vector<16x32xf32>
    %84 = vector.extract_strided_slice %30 {offsets = [0, 64], sizes = [16, 32], strides = [1, 1]} : vector<16x128xf32> to vector<16x32xf32>
    %85 = vector.extract_strided_slice %32 {offsets = [0, 64], sizes = [16, 32], strides = [1, 1]} : vector<16x128xf32> to vector<16x32xf32>
    %86 = tpu.transpose %84, [1, 0] : vector<16x32xf32> -> vector<32x16xf32>
    %cst_37 = arith.constant dense<0.000000e+00> : vector<16x16xf32>
    %87 = tpu.matmul %83, %86, %cst_37 {dimension_numbers = #tpu.dot_dimension_numbers<[1], [0], [0], [1], [0, 0, 1, 1], [], []>} : vector<16x32xf32>, vector<32x16xf32>, vector<16x16xf32> -> vector<16x16xf32>
    %cst_38 = arith.constant 0.176776692 : f32
    %88 = vector.broadcast %cst_38 : f32 to vector<16x16xf32>
    %89 = arith.mulf %87, %88 : vector<16x16xf32>
    %cst_39 = arith.constant -1.000000e+30 : f32
    %90 = vector.broadcast %cst_39 : f32 to vector<16x16xf32>
    %91 = arith.select %35, %90, %89 : vector<16x16xi1>, vector<16x16xf32>
    %cst_40 = arith.constant dense<0xFF800000> : vector<16xf32>
    %92 = vector.multi_reduction <maximumf>, %91, %cst_40 [1] : vector<16x16xf32> to vector<16xf32>
    %93 = vector.shape_cast %92 : vector<16xf32> to vector<16x1xf32>
    %94 = vector.broadcast %93 : vector<16x1xf32> to vector<16x16xf32>
    %95 = arith.subf %91, %94 : vector<16x16xf32>
    %96 = math.exp %95 : vector<16x16xf32>
    %cst_41 = arith.constant dense<0.000000e+00> : vector<16xf32>
    %97 = vector.multi_reduction <add>, %96, %cst_41 [1] : vector<16x16xf32> to vector<16xf32>
    %98 = vector.shape_cast %97 : vector<16xf32> to vector<16x1xf32>
    %99 = vector.broadcast %98 : vector<16x1xf32> to vector<16x16xf32>
    %100 = arith.divf %96, %99 : vector<16x16xf32>
    %cst_42 = arith.constant dense<0.000000e+00> : vector<16x32xf32>
    %101 = tpu.matmul %100, %85, %cst_42 {dimension_numbers = #tpu.dot_dimension_numbers<[1], [0], [0], [1], [0, 0, 1, 1], [], []>} : vector<16x16xf32>, vector<16x32xf32>, vector<16x32xf32> -> vector<16x32xf32>
    %c64 = arith.constant 64 : index
    %c0_43 = arith.constant 0 : index
    %102 = vector.load %arg7[%c64, %c0_43] : memref<128x128xbf16, #tpu.memory_space<vmem>>, vector<32x128xbf16>
    %103 = arith.truncf %101 : vector<16x32xf32> to vector<16x32xbf16>
    %cst_44 = arith.constant dense<0.000000e+00> : vector<16x128xf32>
    %104 = tpu.matmul %103, %102, %cst_44 {dimension_numbers = #tpu.dot_dimension_numbers<[1], [0], [0], [1], [0, 0, 1, 1], [], []>} : vector<16x32xbf16>, vector<32x128xbf16>, vector<16x128xf32> -> vector<16x128xf32>
    %105 = arith.addf %82, %104 : vector<16x128xf32>
    %106 = vector.extract_strided_slice %28 {offsets = [0, 96], sizes = [16, 32], strides = [1, 1]} : vector<16x128xf32> to vector<16x32xf32>
    %107 = vector.extract_strided_slice %30 {offsets = [0, 96], sizes = [16, 32], strides = [1, 1]} : vector<16x128xf32> to vector<16x32xf32>
    %108 = vector.extract_strided_slice %32 {offsets = [0, 96], sizes = [16, 32], strides = [1, 1]} : vector<16x128xf32> to vector<16x32xf32>
    %109 = tpu.transpose %107, [1, 0] : vector<16x32xf32> -> vector<32x16xf32>
    %cst_45 = arith.constant dense<0.000000e+00> : vector<16x16xf32>
    %110 = tpu.matmul %106, %109, %cst_45 {dimension_numbers = #tpu.dot_dimension_numbers<[1], [0], [0], [1], [0, 0, 1, 1], [], []>} : vector<16x32xf32>, vector<32x16xf32>, vector<16x16xf32> -> vector<16x16xf32>
    %cst_46 = arith.constant 0.176776692 : f32
    %111 = vector.broadcast %cst_46 : f32 to vector<16x16xf32>
    %112 = arith.mulf %110, %111 : vector<16x16xf32>
    %cst_47 = arith.constant -1.000000e+30 : f32
    %113 = vector.broadcast %cst_47 : f32 to vector<16x16xf32>
    %114 = arith.select %35, %113, %112 : vector<16x16xi1>, vector<16x16xf32>
    %cst_48 = arith.constant dense<0xFF800000> : vector<16xf32>
    %115 = vector.multi_reduction <maximumf>, %114, %cst_48 [1] : vector<16x16xf32> to vector<16xf32>
    %116 = vector.shape_cast %115 : vector<16xf32> to vector<16x1xf32>
    %117 = vector.broadcast %116 : vector<16x1xf32> to vector<16x16xf32>
    %118 = arith.subf %114, %117 : vector<16x16xf32>
    %119 = math.exp %118 : vector<16x16xf32>
    %cst_49 = arith.constant dense<0.000000e+00> : vector<16xf32>
    %120 = vector.multi_reduction <add>, %119, %cst_49 [1] : vector<16x16xf32> to vector<16xf32>
    %121 = vector.shape_cast %120 : vector<16xf32> to vector<16x1xf32>
    %122 = vector.broadcast %121 : vector<16x1xf32> to vector<16x16xf32>
    %123 = arith.divf %119, %122 : vector<16x16xf32>
    %cst_50 = arith.constant dense<0.000000e+00> : vector<16x32xf32>
    %124 = tpu.matmul %123, %108, %cst_50 {dimension_numbers = #tpu.dot_dimension_numbers<[1], [0], [0], [1], [0, 0, 1, 1], [], []>} : vector<16x16xf32>, vector<16x32xf32>, vector<16x32xf32> -> vector<16x32xf32>
    %c96 = arith.constant 96 : index
    %c0_51 = arith.constant 0 : index
    %125 = vector.load %arg7[%c96, %c0_51] : memref<128x128xbf16, #tpu.memory_space<vmem>>, vector<32x128xbf16>
    %126 = arith.truncf %124 : vector<16x32xf32> to vector<16x32xbf16>
    %cst_52 = arith.constant dense<0.000000e+00> : vector<16x128xf32>
    %127 = tpu.matmul %126, %125, %cst_52 {dimension_numbers = #tpu.dot_dimension_numbers<[1], [0], [0], [1], [0, 0, 1, 1], [], []>} : vector<16x32xbf16>, vector<32x128xbf16>, vector<16x128xf32> -> vector<16x128xf32>
    %128 = arith.addf %105, %127 : vector<16x128xf32>
    %129 = arith.addf %1, %128 : vector<16x128xf32>
    %c0_53 = arith.constant 0 : index
    %c0_54 = arith.constant 0 : index
    %130 = vector.load %arg8[%c0_53, %c0_54] : memref<1x128xf32, #tpu.memory_space<vmem>>, vector<1x128xf32>
    %131 = vector.broadcast %130 : vector<1x128xf32> to vector<16x128xf32>
    %132 = arith.addf %129, %131 : vector<16x128xf32>
    %c0_55 = arith.constant 0 : index
    %c0_56 = arith.constant 0 : index
    %c0_57 = arith.constant 0 : index
    %133 = vector.load %arg9[%c0_55, %c0_56, %c0_57] : memref<1x16x128xf32, #tpu.memory_space<vmem>>, vector<1x16x128xf32>
    %134 = vector.shape_cast %133 : vector<1x16x128xf32> to vector<16x128xf32>
    %135 = vector.shape_cast %132 : vector<16x128xf32> to vector<1x16x128xf32>
    tpu.vector_store %arg9[%c0_55, %c0_56, %c0_57], %135 {strides = array<i32>} : memref<1x16x128xf32, #tpu.memory_space<vmem>>, vector<1x16x128xf32>,
    return
  }
  func.func @transform_0(%arg0: i32) -> (i32, i32, i32) {
    %c0_i32 = arith.constant 0 : i32
    %c0_i32_0 = arith.constant 0 : i32
    %c0_i32_1 = arith.constant 0 : i32
    return %arg0, %c0_i32, %c0_i32_0 : i32, i32, i32
  }
  func.func @transform_1(%arg0: i32) -> (i32, i32) {
    %c0_i32 = arith.constant 0 : i32
    %c0_i32_0 = arith.constant 0 : i32
    %c0_i32_1 = arith.constant 0 : i32
    return %c0_i32, %c0_i32_0 : i32, i32
  }
  func.func @transform_2(%arg0: i32) -> (i32, i32) {
    %c0_i32 = arith.constant 0 : i32
    %c0_i32_0 = arith.constant 0 : i32
    %c0_i32_1 = arith.constant 0 : i32
    return %c0_i32, %c0_i32_0 : i32, i32
  }
  func.func @transform_3(%arg0: i32) -> (i32, i32) {
    %c0_i32 = arith.constant 0 : i32
    %c0_i32_0 = arith.constant 0 : i32
    %c0_i32_1 = arith.constant 0 : i32
    return %c0_i32, %c0_i32_0 : i32, i32
  }
  func.func @transform_4(%arg0: i32) -> (i32, i32) {
    %c0_i32 = arith.constant 0 : i32
    %c0_i32_0 = arith.constant 0 : i32
    %c0_i32_1 = arith.constant 0 : i32
    return %c0_i32, %c0_i32_0 : i32, i32
  }
  func.func @transform_5(%arg0: i32) -> (i32, i32) {
    %c0_i32 = arith.constant 0 : i32
    %c0_i32_0 = arith.constant 0 : i32
    %c0_i32_1 = arith.constant 0 : i32
    return %c0_i32, %c0_i32_0 : i32, i32
  }
  func.func @transform_6(%arg0: i32) -> (i32, i32) {
    %c0_i32 = arith.constant 0 : i32
    %c0_i32_0 = arith.constant 0 : i32
    %c0_i32_1 = arith.constant 0 : i32
    return %c0_i32, %c0_i32_0 : i32, i32
  }
  func.func @transform_7(%arg0: i32) -> (i32, i32) {
    %c0_i32 = arith.constant 0 : i32
    %c0_i32_0 = arith.constant 0 : i32
    %c0_i32_1 = arith.constant 0 : i32
    return %c0_i32, %c0_i32_0 : i32, i32
  }
  func.func @transform_8(%arg0: i32) -> (i32, i32, i32) {
    %c0_i32 = arith.constant 0 : i32
    %c0_i32_0 = arith.constant 0 : i32
    %c0_i32_1 = arith.constant 0 : i32
    return %arg0, %c0_i32, %c0_i32_0 : i32, i32, i32
  }
}

</mosaic_0001>

<bundles_post_ra>
// kernel: tpu_custom_call.1
= control target key start
LH: loop header
LB: loop body
LE: loop exit
PB: predicated region body
PF: predicated region fallthrough
CT: control target
= control target key end

     0   :  { %s3512_s0 = inlined_call_operand.hbm [shape: f32[2,16,128], index: 0, kind: input, shape index: {}]   ;;  %s3513_s1 = inlined_call_operand.hbm [shape: f32[1,128], index: 1, kind: input, shape index: {}]   ;;  %s3514_s2 = inlined_call_operand.hbm [shape: f32[1,128], index: 2, kind: input, shape index: {}]   ;;  %s3515_s3 = inlined_call_operand.hbm [shape: bf16[128,128], index: 3, kind: input, shape index: {}]   ;;  %s3516_s4 = inlined_call_operand.hbm [shape: bf16[128,128], index: 4, kind: input, shape index: {}]   ;;  %s3517_s5 = inlined_call_operand.hbm [shape: bf16[128,128], index: 5, kind: input, shape index: {}]   ;;  %s3518_s6 = inlined_call_operand.hbm [shape: bf16[128,128], index: 6, kind: input, shape index: {}]   ;;  %s3519_s7 = inlined_call_operand.hbm [shape: f32[1,128], index: 7, kind: input, shape index: {}]   ;;  %s3520_s8 = inlined_call_operand.hbm [shape: f32[2,16,128], index: 8, kind: output, shape index: {}]  }
   0x1   :  { %3524 = sst [smem:[#allocation23_spill]] %s3513_s1 }
   0x2   :  { %13 = vsyncpa [#allocation3], 0 }
   0x3   :  { %15 = vsyncpa [#allocation3 + $0x1], 0 }
   0x4   :  { %16 = vsyncpa [#allocation6], 0 }
   0x5   :  { %17 = vsyncpa [#allocation9], 0 }
   0x6   :  { %18 = vsyncpa [#allocation12], 0 }
   0x7   :  { %19 = vsyncpa [#allocation15], 0 }
   0x8   :  { %20 = vsyncpa [#allocation4], 0 }
   0x9   :  { %22 = vsyncpa [#allocation4 + $0x1], 0  ;;  %s2965_s27 = smov 0   ;;  %s2967_s28 = smov 0  }
   0xa   :  { %s2969_s29 = smov 0   ;;  %s2971_s30 = smov 0  }
   0xb LB: > { %s2900_s9 = smov [#allocation5]   ;;  %s2986_s11 = sadd.s32 4294967295, %s2898_s30   ;;  %s2898_s30 = sphi %s2971_s30, %s3551_s30   ;;  %s2894_s29 = sphi %s2969_s29, %s3550_s29   ;;  %s2890_s28 = sphi %s2967_s28, %s3549_s28   ;;  %s2886_s27 = sphi %s2965_s27, %s3548_s27  }
   0xc   : > { %s245_s10 = sshll.u32 %s2900_s9, 4  ;;  %p2013_p0 = scmp.ge.s32.totalorder %s2898_s30, 1  ;;  %s2991_s10 = int_to_ptr.vmem [resolvable:$true] %s245_s10 }
   0xd   : > { %p3521_p1 = scmp.eq.s32.totalorder %s2986_s11, 0  ;;  %p232_p2 = scmp.lt.s32.totalorder %s2898_s30, 3 }
   0xe   : > { %s2901_s13 = smov [#allocation8]   ;;  %s2902_s16 = smov [#allocation11]  }
   0xf   : > { %p2993_p3 = pnand %p2013_p0, %p232_p2  ;;  %s266_s14 = sshll.u32 %s2901_s13, 4  ;;  %s3000_s14 = int_to_ptr.vmem [resolvable:$true] %s266_s14 }
  0x10   : > { %s292_s17 = sshll.u32 %s2902_s16, 4  ;;  %s3527_s1 = sld [smem:[#allocation23_spill]]  ;;  %s3008_s17 = int_to_ptr.vmem [resolvable:$true] %s292_s17 }
  0x11   : > { %s3525_s12 = scalar_select %p2993_p3, 1, 0 }
  0x12   : > { %p2396_p5 = pneg %p2993_p3 }
  0x14   : > { %p3004_p6 = pnand %p2396_p5, %p3521_p1 }
  0x16   : > { %s2590_s20 = scalar_lea.hbm %s3527_s1, 16  ;;  %p3018_p8 = pneg %p3004_p6 }
  0x17   : > { %p2591_p7 = scmp.ne.s32.totalorder %s3527_s1, %s2590_s20  ;;  %p2597_p11 = scmp.lt.u32.totalorder %s2590_s20, %s3527_s1 }
  0x19   : > { %p2593_p9 = pnand %p3018_p8, %p2591_p7 }
  0x1b   : > { %p2594_p10 = pneg %p2593_p9 }
  0x1d   : > { %p2599_p12 = pnand %p2597_p11, %p2594_p10 }
  0x1f   : > { %2602 = shalt.err (!%p2599_p12)
}
  0x20   : > { %s2603_s26 = scalar_lea.vmem %s2991_s10, 16  ;;  %s2610_s9 = scalar_lea.vmem %s2991_s10, 32 }
  0x21   : > { %p2604_p13 = scmp.ne.s32.totalorder %s2991_s10, %s2603_s26  ;;  %p2611_p5 = scmp.lt.s32.totalorder %s2991_s10, %s2991_s10 }
  0x22   : > { %p2612_p7 = scmp.lt.s32.totalorder %s2610_s9, %s2603_s26 }
  0x23   : > { %p2606_p0 = pnand %p2604_p13, %p3018_p8 }
  0x24   : > { %p2613_p9 = por %p2612_p7, %p2611_p5 }
  0x25   : > { %p2607_p2 = pneg %p2606_p0 }
  0x27   : > { %p2614_p4 = pnand %p2613_p9, %p2607_p2 }
  0x29   : > { %2617 = shalt.err (!%p2614_p4)
}
  0x2a   : > { %2399 = dma.hbm_to_vmem [thread:$0]  (!%p3004_p6), %s3527_s1, 16, %s2991_s10, [#allocation6]  }
  0x2b   : > { %s2618_s20 = scalar_lea.hbm %s3515_s3, 1024 }
  0x2c   : > { %p2619_p10 = scmp.ne.s32.totalorder %s3515_s3, %s2618_s20  ;;  %p2625_p4 = scmp.lt.u32.totalorder %s2618_s20, %s3515_s3 }
  0x2e   : > { %p2621_p11 = pnand %p2619_p10, %p3018_p8 }
  0x30   : > { %p2622_p12 = pneg %p2621_p11 }
  0x32   : > { %p2627_p13 = pnand %p2625_p4, %p2622_p12 }
  0x34   : > { %2630 = shalt.err (!%p2627_p13)
}
  0x35   : > { %s2631_s10 = scalar_lea.vmem %s3000_s14, 1024  ;;  %p2639_p7 = scmp.lt.s32.totalorder %s3000_s14, %s3000_s14 }
  0x36   : > { %p2632_p0 = scmp.ne.s32.totalorder %s3000_s14, %s2631_s10  ;;  %p2640_p9 = scmp.lt.s32.totalorder %s2631_s10, %s2631_s10 }
  0x38   : > { %p2634_p2 = pnand %p2632_p0, %p3018_p8  ;;  %p2641_p10 = por %p2640_p9, %p2639_p7 }
  0x3a   : > { %p2635_p5 = pneg %p2634_p2 }
  0x3c   : > { %p2642_p11 = pnand %p2641_p10, %p2635_p5 }
  0x3e   : > { %2645 = shalt.err (!%p2642_p11)
}
  0x3f   : > { %s2903_s26 = smov 64   ;;  %s2904_s9 = smov 4  }
  0x40   : > { %2405 = dma.hbm_to_vmem [thread:$0]  (!%p3004_p6), %s3515_s3, 1024, %s3000_s14, [#allocation9], %s2903_s26, %s2903_s26, %s2904_s9  }
  0x41   : > { %s2646_s20 = scalar_lea.hbm %s3517_s5, 1024 }
  0x42   : > { %p2647_p12 = scmp.ne.s32.totalorder %s3517_s5, %s2646_s20  ;;  %p2653_p0 = scmp.lt.u32.totalorder %s2646_s20, %s3517_s5 }
  0x44   : > { %p2649_p4 = pnand %p2647_p12, %p3018_p8 }
  0x46   : > { %p2650_p13 = pneg %p2649_p4 }
  0x48   : > { %p2655_p2 = pnand %p2653_p0, %p2650_p13 }
  0x4a   : > { %2658 = shalt.err (!%p2655_p2)
}
  0x4b   : > { %s2659_s14 = scalar_lea.vmem %s3008_s17, 1024  ;;  %p2667_p10 = scmp.lt.s32.totalorder %s3008_s17, %s3008_s17 }
  0x4c   : > { %p2660_p5 = scmp.ne.s32.totalorder %s3008_s17, %s2659_s14  ;;  %p2668_p11 = scmp.lt.s32.totalorder %s2659_s14, %s2659_s14 }
  0x4e   : > { %p2662_p7 = pnand %p2660_p5, %p3018_p8  ;;  %p2669_p12 = por %p2668_p11, %p2667_p10 }
  0x50   : > { %p2663_p9 = pneg %p2662_p7 }
  0x52   : > { %p2670_p4 = pnand %p2669_p12, %p2663_p9 }
  0x54   : > { %2673 = shalt.err (!%p2670_p4)
}
  0x55   : > { %2411 = dma.hbm_to_vmem [thread:$0]  (!%p3004_p6), %s3517_s5, 1024, %s3008_s17, [#allocation12], %s2903_s26, %s2903_s26, %s2904_s9  }
  0x56   : > { %s2905_s16 = smov [#allocation7]   ;;  %s2906_s19 = smov [#allocation10]  }
  0x57   : > { %s256_s18 = sshll.u32 %s2905_s16, 4  ;;  %s279_s20 = sshll.u32 %s2906_s19, 4  ;;  %s257_s18 = int_to_ptr.vmem [resolvable:$true] %s256_s18  ;;  %s280_s20 = int_to_ptr.vmem [resolvable:$true] %s279_s20 }
  0x58   : > { %s2674_s24 = scalar_lea.hbm %s3514_s2, 16 }
  0x59   : > { %p2675_p13 = scmp.ne.s32.totalorder %s3514_s2, %s2674_s24  ;;  %p2681_p5 = scmp.lt.u32.totalorder %s2674_s24, %s3514_s2 }
  0x5b   : > { %p2677_p0 = pnand %p2675_p13, %p3018_p8 }
  0x5d   : > { %p2678_p2 = pneg %p2677_p0 }
  0x5f   : > { %p2683_p7 = pnand %p2681_p5, %p2678_p2 }
  0x61   : > { %2686 = shalt.err (!%p2683_p7)
}
  0x62   : > { %s2687_s17 = scalar_lea.vmem %s257_s18, 16  ;;  %s2694_s13 = scalar_lea.vmem %s257_s18, 32 }
  0x63   : > { %p2688_p9 = scmp.ne.s32.totalorder %s257_s18, %s2687_s17  ;;  %p2695_p12 = scmp.lt.s32.totalorder %s257_s18, %s257_s18 }
  0x64   : > { %p2696_p4 = scmp.lt.s32.totalorder %s2694_s13, %s2687_s17 }
  0x65   : > { %p2690_p10 = pnand %p2688_p9, %p3018_p8 }
  0x66   : > { %p2697_p1 = por %p2696_p4, %p2695_p12 }
  0x67   : > { %p2691_p11 = pneg %p2690_p10 }
  0x69   : > { %p2698_p3 = pnand %p2697_p1, %p2691_p11 }
  0x6b   : > { %2701 = shalt.err (!%p2698_p3)
}
  0x6c   : > { %2402 = dma.hbm_to_vmem [thread:$0]  (!%p3004_p6), %s3514_s2, 16, %s257_s18, [#allocation6]  }
  0x6d   : > { %s2702_s22 = scalar_lea.hbm %s3516_s4, 1024 }
  0x6e   : > { %p2703_p13 = scmp.ne.s32.totalorder %s3516_s4, %s2702_s22  ;;  %p2709_p3 = scmp.lt.u32.totalorder %s2702_s22, %s3516_s4 }
  0x70   : > { %p2705_p0 = pnand %p2703_p13, %p3018_p8 }
  0x72   : > { %p2706_p1 = pneg %p2705_p0 }
  0x74   : > { %p2711_p2 = pnand %p2709_p3, %p2706_p1 }
  0x76   : > { %2714 = shalt.err (!%p2711_p2)
}
  0x77   : > { %s2715_s17 = scalar_lea.vmem %s280_s20, 1024  ;;  %p2723_p10 = scmp.lt.s32.totalorder %s280_s20, %s280_s20 }
  0x78   : > { %p2716_p5 = scmp.ne.s32.totalorder %s280_s20, %s2715_s17  ;;  %p2724_p11 = scmp.lt.s32.totalorder %s2715_s17, %s2715_s17 }
  0x7a   : > { %p2718_p7 = pnand %p2716_p5, %p3018_p8  ;;  %p2725_p12 = por %p2724_p11, %p2723_p10 }
  0x7c   : > { %p2719_p9 = pneg %p2718_p7 }
  0x7e   : > { %p2726_p4 = pnand %p2725_p12, %p2719_p9 }
  0x80   : > { %2729 = shalt.err (!%p2726_p4)
}
  0x81   : > { %2408 = dma.hbm_to_vmem [thread:$0]  (!%p3004_p6), %s3516_s4, 1024, %s280_s20, [#allocation9], %s2903_s26, %s2903_s26, %s2904_s9  }
  0x82   : > { %s2907_s16 = smov [#allocation13]   ;;  %s2908_s1 = smov [#allocation14]  }
  0x83   : > { %s305_s19 = sshll.u32 %s2907_s16, 4  ;;  %s319_s21 = sshll.u32 %s2908_s1, 4  ;;  %s306_s19 = int_to_ptr.vmem [resolvable:$true] %s305_s19  ;;  %s320_s21 = int_to_ptr.vmem [resolvable:$true] %s319_s21 }
  0x84   : > { %s2730_s25 = scalar_lea.hbm %s3518_s6, 1024 }
  0x85   : > { %p2731_p13 = scmp.ne.s32.totalorder %s3518_s6, %s2730_s25  ;;  %p2737_p3 = scmp.lt.u32.totalorder %s2730_s25, %s3518_s6 }
  0x87   : > { %p2733_p0 = pnand %p2731_p13, %p3018_p8 }
  0x89   : > { %p2734_p1 = pneg %p2733_p0 }
  0x8b   : > { %p2739_p2 = pnand %p2737_p3, %p2734_p1 }
  0x8d   : > { %2742 = shalt.err (!%p2739_p2)
}
  0x8e   : > { %s2743_s20 = scalar_lea.vmem %s306_s19, 1024  ;;  %p2751_p10 = scmp.lt.s32.totalorder %s306_s19, %s306_s19 }
  0x8f   : > { %p2744_p5 = scmp.ne.s32.totalorder %s306_s19, %s2743_s20  ;;  %p2752_p11 = scmp.lt.s32.totalorder %s2743_s20, %s2743_s20 }
  0x91   : > { %p2746_p7 = pnand %p2744_p5, %p3018_p8  ;;  %p2753_p12 = por %p2752_p11, %p2751_p10 }
  0x93   : > { %p2747_p9 = pneg %p2746_p7 }
  0x95   : > { %p2754_p4 = pnand %p2753_p12, %p2747_p9 }
  0x97   : > { %2757 = shalt.err (!%p2754_p4)
}
  0x98   : > { %2414 = dma.hbm_to_vmem [thread:$0]  (!%p3004_p6), %s3518_s6, 1024, %s306_s19, [#allocation12], %s2903_s26, %s2903_s26, %s2904_s9  }
  0x99   : > { %s2758_s24 = scalar_lea.hbm %s3519_s7, 16 }
  0x9a   : > { %p2759_p13 = scmp.ne.s32.totalorder %s3519_s7, %s2758_s24  ;;  %p2765_p3 = scmp.lt.u32.totalorder %s2758_s24, %s3519_s7 }
  0x9c   : > { %p2761_p0 = pnand %p2759_p13, %p3018_p8 }
  0x9e   : > { %p2762_p1 = pneg %p2761_p0 }
  0xa0   : > { %p2767_p2 = pnand %p2765_p3, %p2762_p1 }
  0xa2   : > { %2770 = shalt.err (!%p2767_p2)
}
  0xa3   : > { %s2771_s18 = scalar_lea.vmem %s320_s21, 16  ;;  %s2778_s26 = scalar_lea.vmem %s320_s21, 32 }
  0xa4   : > { %p2772_p5 = scmp.ne.s32.totalorder %s320_s21, %s2771_s18  ;;  %p2779_p10 = scmp.lt.s32.totalorder %s320_s21, %s320_s21 }
  0xa5   : > { %p2780_p11 = scmp.lt.s32.totalorder %s2778_s26, %s2771_s18 }
  0xa6   : > { %p2774_p7 = pnand %p2772_p5, %p3018_p8 }
  0xa7   : > { %p2781_p12 = por %p2780_p11, %p2779_p10 }
  0xa8   : > { %p2775_p9 = pneg %p2774_p7 }
  0xaa   : > { %p2782_p4 = pnand %p2781_p12, %p2775_p9 }
  0xac   : > { %2785 = shalt.err (!%p2782_p4)
}
  0xad   : > { %2417 = dma.hbm_to_vmem [thread:$0]  (!%p3004_p6), %s3519_s7, 16, %s320_s21, [#allocation15]  }
  0xae   : > { %s2012_s23 = sadd.s32 4294967294, %s2898_s30   ;;  %s3172_s15 = sadd.s32 1, %s2898_s30  }
  0xaf   : > { %s35_s20 = sadd.s32 1, %s2894_s29  ;;  %s32_s13 = ssub.s32 %s2898_s30, %s3172_s15 }
  0xb0   : > { %p42_p8 = scmp.ne.s32.totalorder %s2894_s29, %s2890_s28  ;;  %p33_p13 = scmp.eq.s32.totalorder %s32_s13, 0 }
  0xb1   : > { %p43_p0 = scmp.eq.s32.totalorder %s2898_s30, 0  ;;  %p48_p1 = scmp.ne.s32.totalorder %s2890_s28, %s2886_s27 }
  0xb2   : > { %p219_p3 = scmp.eq.s32.totalorder %s2986_s11, 1  ;;  %p3529_p5 = scmp.eq.s32.totalorder %s2986_s11, 0 }
  0xb3   : > { %s3184_s16 = scalar_select %p33_p13, %s2894_s29, %s35_s20  }
  0xb4   : > { %p44_p2 = por %p43_p0, %p42_p8  ;;  %p3188_p7 = por %p3529_p5, %p48_p1 }
  0xb5   : > { %p3192_p6 = por %p219_p3, %p42_p8  ;;  %p225_p9 = scmp.eq.s32.totalorder %s2012_s23, 1 }
  0xb6   : > { %p2433_p10 = scmp.lt.s32.totalorder %s2898_s30, 2  ;;  %s330_s22 = sand.u32 1, %s2894_s29  }
  0xb7   : > { %s3531_s21 = scalar_select %p3192_p6, 1, 0 }
  0xb8   : > { %p3198_p11 = por %p225_p9, %p48_p1  ;;  %s2022_s25 = sshll.u32 %s330_s22, 4 }
  0xb9   : > { %s2103_s14 = sshll.u32 %s2898_s30, 8  ;;  %s334_s26 = scalar_lea.vmem [#allocation2], %s2022_s25 }
  0xba   : > { %s3532_s24 = scalar_select %p3198_p11, 1, 0 }
  0xbb   : > { %s3206_s18 = scalar_lea.hbm %s3512_s0, %s2103_s14  ;;  %s341_s9 = sshll.u32 %s334_s26, 4  ;;  %s3212_s9 = int_to_ptr.vmem [resolvable:$true] %s341_s9 }
  0xbc   : > { %p3208_p12 = pnand %p2433_p10, %p44_p2  ;;  %s3214_s23 = scalar_lea.sflag [#allocation3], %s330_s22 }
  0xbd   : > { %s2786_s20 = scalar_lea.hbm %s3206_s18, 256  ;;  %s2791_s14 = scalar_lea.hbm %s3512_s0, 512 }
  0xbe   : > { %p2787_p4 = scmp.ne.s32.totalorder %s3206_s18, %s2786_s20  ;;  %p2788_p8 = pneg %p3208_p12 }
  0xbf   : > { %p2792_p1 = scmp.lt.u32.totalorder %s3206_s18, %s3512_s0  ;;  %p2793_p3 = scmp.lt.u32.totalorder %s2791_s14, %s2786_s20 }
  0xc0   : > { %p2789_p13 = pnand %p2788_p8, %p2787_p4  ;;  %p2795_p5 = scmp.lt.u32.totalorder %s2786_s20, %s3206_s18 }
  0xc1   : > { %p2794_p2 = por %p2793_p3, %p2792_p1 }
  0xc2   : > { %p2790_p0 = pneg %p2789_p13 }
  0xc3   : > { %p2796_p9 = por %p2795_p5, %p2794_p2 }
  0xc5   : > { %p2797_p10 = pnand %p2796_p9, %p2790_p0 }
  0xc7   : > { %2800 = shalt.err (!%p2797_p10)
}
  0xc8   : > { %s2801_s22 = scalar_lea.vmem %s3212_s9, 256  ;;  %s2909_s26 = smov [#allocation2]  }
  0xc9   : > { %p2802_p4 = scmp.ne.s32.totalorder %s3212_s9, %s2801_s22  ;;  %s2806_s13 = sshll.u32 %s2909_s26, 4  ;;  %s2807_s13 = int_to_ptr.vmem [resolvable:$false] %s2806_s13 }
  0xca   : > { %s2808_s25 = scalar_lea.vmem %s2807_s13, 512  ;;  %p2809_p6 = scmp.lt.s32.totalorder %s3212_s9, %s2807_s13 }
  0xcb   : > { %p2804_p13 = pnand %p2802_p4, %p2788_p8  ;;  %p2810_p1 = scmp.lt.s32.totalorder %s2808_s25, %s2801_s22 }
  0xcd   : > { %p2805_p11 = pneg %p2804_p13  ;;  %p2811_p3 = por %p2810_p1, %p2809_p6 }
  0xcf   : > { %p2812_p2 = pnand %p2811_p3, %p2805_p11 }
  0xd1   : > { %2815 = shalt.err (!%p2812_p2)
}
  0xd2   : > { %s2910_s20 = smov 128   ;;  %s2911_s14 = smov 8  }
  0xd3   : > { %2421 = dma.hbm_to_vmem [thread:$0]  (!%p3208_p12), %s3206_s18, 256, %s3212_s9, %s3214_s23, %s2910_s20, %s2910_s20, %s2911_s14  }
  0xd4   : > { %p3534_p8 = scmp.ne.s32.totalorder %s3525_s12, 0 }
  0xd5   : > { %s3245_s10 = sand.u32 (!%p3534_p8), 1, %s2890_s28  }
  0xd6   : > { %353 = sbr.rel (%p3534_p8) target bundleno = 3814 (0xee6), region = 52  ;;  %s2026_s17 = sshll.u32 (!%p3534_p8), %s3245_s10, 4 }
  0xd7   : > { %s356_s22 = scalar_lea.sflag (!%p3534_p8), [#allocation3], %s3245_s10  ;;  %s359_s26 = scalar_lea.vmem (!%p3534_p8), [#allocation2], %s2026_s17 }
  0xdd   : > { %2861 = dma.done.wait (%p3188_p7), %s356_s22, 256  }
  0xde   : > { %2863 = vsyncadd (%p3188_p7), %s356_s22, 4294967040  ;;  %p3535_p6 = scmp.eq.s32.totalorder %s2986_s11, 0 }
  0xe0   : > { %2865 = dma.done.wait (%p3535_p6), [#allocation6], 32   ;;  %p3536_p11 = pmov %p3535_p6 }
  0xe1   : > { %p3537_p12 = pmov %p3535_p6 }
  0xe2   : > { %2867 = vsyncadd (%p3536_p11), [#allocation6], 4294967264 }
  0xe3   : > { %2869 = dma.done.wait (%p3537_p12), [#allocation9], 2048   ;;  %p3538_p0 = pmov %p3535_p6 }
  0xe5   : > { %2871 = vsyncadd (%p3538_p0), [#allocation9], 4294965248  ;;  %p3539_p5 = pmov %p3538_p0 }
  0xe6   : > { %p3540_p9 = pmov %p3538_p0 }
  0xe7   : > { %2873 = dma.done.wait (%p3539_p5), [#allocation12], 2048  }
  0xe8   : > { %2875 = vsyncadd (%p3540_p9), [#allocation12], 4294965248  ;;  %p3541_p7 = pmov %p3538_p0 }
  0xe9   : > { %p3542_p10 = pmov %p3538_p0 }
  0xea   : > { %2877 = dma.done.wait (%p3541_p7), [#allocation15], 16  }
  0xeb   : > { %2879 = vsyncadd (%p3542_p10), [#allocation15], 4294967280  ;;  %v3271_v0 = vld [vmem:[%s359_s26] sm:$0xff]  ;;  %v3273_v1 = vld [vmem:[%s359_s26 + $0x8] sm:$0xff]  ;;  %v2912_v4 = vmov 0.0   ;;  %vm2913_vm0 = vmmov 0  }
  0xec   : > { %425 = vadd.xlane.f32.xlu0 %v3271_v0  ;;  %v2522_v2 = vld [vmem:[#allocation8] sm:$0xff]   ;;  %2176 = vmatprep.subr.bf16.mxu0 %v2912_v4  ;;  %v2524_v5 = vld [vmem:[#allocation8 + $0x8] sm:$0xff]   ;;  %v2526_v15 = vld [vmem:[#allocation8 + $0x10] sm:$0xff]   ;;  %vm787_vm1 = vcmask 261120   ;;  %vm879_vm4 = vcmask 130048   ;;  %s2914_s12 = smov 96  }
  0xed   : > { %v2523_v3 = vld [vmem:[#allocation10] sm:$0xff]   ;;  %2196 = vmatprep.subr.bf16.mxu1 %v2912_v4  ;;  %2177 = vmatpush3.bf16.msra.mxu0 %v2522_v2  ;;  %v2525_v14 = vld [vmem:[#allocation10 + $0x8] sm:$0xff]   ;;  %v2527_v16 = vld [vmem:[#allocation10 + $0x10] sm:$0xff]   ;;  %s2915_s1 = smov 64   ;;  %s2916_s18 = smov 32  }
  0xee   : > { %2197 = vmatpush3.bf16.msra.mxu1 %v2523_v3  ;;  %2178 = vmatprep.subr.bf16.mxu0 %v2912_v4  ;;  %v2528_v17 = vld [vmem:[#allocation8 + $0x18] sm:$0xff]   ;;  %v2530_v19 = vld [vmem:[#allocation8 + $0x20] sm:$0xff]   ;;  %v2532_v21 = vld [vmem:[#allocation8 + $0x28] sm:$0xff]   ;;  %s419_s9 = scalar_lea.vmem [#allocation16], %s2026_s17  ;;  %s2104_s23 = sshll.u32 %s2986_s11, 8 }
  0xef   : > { %2198 = vmatprep.subr.bf16.mxu1 %v2912_v4  ;;  %v2529_v18 = vld [vmem:[#allocation10 + $0x18] sm:$0xff]   ;;  %v2531_v20 = vld [vmem:[#allocation10 + $0x20] sm:$0xff]   ;;  %2192 = vmatprep.mubr.msk.bf16.mxu0 %vm2913_vm0, %v2912_v4  ;;  %v2533_v22 = vld [vmem:[#allocation10 + $0x28] sm:$0xff]   ;;  %s1872_s19 = sshll.u32 %s419_s9, 4  ;;  %s3468_s20 = scalar_lea.hbm %s3520_s8, %s2104_s23  ;;  %s3462_s19 = int_to_ptr.vmem [resolvable:$true] %s1872_s19 }
  0xf0   : > { %427 = vadd.xlane.f32.xlu0 %v3273_v1  ;;  %2212 = vmatprep.mubr.msk.bf16.mxu1 %vm2913_vm0, %v2912_v4  ;;  %v2534_v23 = vld [vmem:[#allocation8 + $0x30] sm:$0xff]   ;;  %v2536_v25 = vld [vmem:[#allocation8 + $0x38] sm:$0xff]   ;;  %v2538_v43 = vld [vmem:[#allocation11] sm:$0xff]   ;;  %s1859_s14 = scalar_lea.sflag [#allocation4], %s3245_s10  ;;  %s2816_s17 = scalar_lea.vmem %s3462_s19, 256 }
  0xf1   : > { %2179 = vmatpush3.bf16.msra.mxu0 %v2524_v5  ;;  %v2535_v24 = vld [vmem:[#allocation10 + $0x30] sm:$0xff]   ;;  %v2537_v26 = vld [vmem:[#allocation10 + $0x38] sm:$0xff]   ;;  %v2539_v45 = vld [vmem:[#allocation11 + $0x8] sm:$0xff]   ;;  %p2817_p4 = scmp.ne.s32.totalorder %s3462_s19, %s2816_s17  ;;  %p3545_p13 = scmp.ne.s32.totalorder %s3531_s21, 0 }
  0xf2   : > { %2180 = vmatprep.subr.bf16.mxu0 %v2912_v4  ;;  %2199 = vmatpush3.bf16.msra.mxu1 %v2525_v14  ;;  %v2035_v35 = vld [vmem:[#allocation5] ss:$0 sm:$0xff]  ;;  %v2036_v39 = vld [vmem:[#allocation7] ss:$0 sm:$0xff]  ;;  %v2540_v46 = vld [vmem:[#allocation11 + $0x10] sm:$0xff]   ;;  %s2917_s11 = smov [#allocation16]  }
  0xf3   : > { %2200 = vmatprep.subr.bf16.mxu1 %v2912_v4  ;;  %v2541_v47 = vld [vmem:[#allocation11 + $0x18] sm:$0xff]   ;;  %v2542_v48 = vld [vmem:[#allocation11 + $0x20] sm:$0xff]   ;;  %v2543_v49 = vld [vmem:[#allocation11 + $0x28] sm:$0xff]   ;;  %p2818_p1 = pnand %p2817_p4, %p3545_p13  ;;  %s2820_s22 = sshll.u32 %s2917_s11, 4  ;;  %s2821_s22 = int_to_ptr.vmem [resolvable:$false] %s2820_s22 }
  0xf4   : > { %v2544_v50 = vld [vmem:[#allocation11 + $0x30] sm:$0xff]   ;;  %v2545_v51 = vld [vmem:[#allocation11 + $0x38] sm:$0xff]   ;;  %vm3320_vm2 = vmpackc.low %vm787_vm1, %vm787_vm1  ;;  %s2822_s26 = scalar_lea.vmem %s2821_s22, 512  ;;  %p2823_p2 = scmp.lt.s32.totalorder %s3462_s19, %s2821_s22 }
  0xf5   : > { %2181 = vmatpush3.bf16.msra.mxu0 %v2526_v15  ;;  %p2819_p3 = pneg %p2818_p1  ;;  %p2824_p8 = scmp.lt.s32.totalorder %s2822_s26, %s2816_s17 }
  0xf6   : > { %2201 = vmatpush3.bf16.msra.mxu1 %v2527_v16  ;;  %2182 = vmatprep.subr.bf16.mxu0 %v2912_v4 }
  0xf7   : > { %2202 = vmatprep.subr.bf16.mxu1 %v2912_v4  ;;  %p2825_p6 = por %p2824_p8, %p2823_p2 }
  0xf9   : > { %2183 = vmatpush3.bf16.msra.mxu0 %v2528_v17  ;;  %p2826_p11 = pnand %p2825_p6, %p2819_p3 }
  0xfa   : > { %2203 = vmatpush3.bf16.msra.mxu1 %v2529_v18  ;;  %2184 = vmatprep.subr.bf16.mxu0 %v2912_v4 }
  0xfb   : > { %2204 = vmatprep.subr.bf16.mxu1 %v2912_v4 }
  0xfd   : > { %2185 = vmatpush3.bf16.msra.mxu0 %v2530_v19 }
  0xfe   : > { %2205 = vmatpush3.bf16.msra.mxu1 %v2531_v20  ;;  %2186 = vmatprep.subr.bf16.mxu0 %v2912_v4 }
  0xff   : > { %2206 = vmatprep.subr.bf16.mxu1 %v2912_v4 }
 0x101   : > { %2187 = vmatpush3.bf16.msra.mxu0 %v2532_v21 }
 0x102   : > { %2207 = vmatpush3.bf16.msra.mxu1 %v2533_v22  ;;  %2188 = vmatprep.subr.bf16.mxu0 %v2912_v4 }
 0x103   : > { %2208 = vmatprep.subr.bf16.mxu1 %v2912_v4 }
 0x105   : > { %2189 = vmatpush3.bf16.msra.mxu0 %v2534_v23 }
 0x106   : > { %2209 = vmatpush3.bf16.msra.mxu1 %v2535_v24  ;;  %2190 = vmatprep.subr.bf16.mxu0 %v2912_v4 }
 0x107   : > { %2210 = vmatprep.subr.bf16.mxu1 %v2912_v4 }
 0x109   : > { %2191 = vmatpush3.bf16.msra.mxu0 %v2536_v25 }
 0x10a   : > { %2211 = vmatpush3.bf16.msra.mxu1 %v2537_v26  ;;  %2216 = vmatprep.subr.bf16.mxu0 %v2912_v4 }
 0x179   : > { %v426_v6 = vpop.xlane.xlu0 %425 }
 0x17a   : > { %v430_v7 = vmul.f32 0.0078125, %v426_v6 }
 0x17c   : > { %v432_v8 = vsub.f32 %v3271_v0, %v430_v7 }
 0x17d   : > { %v428_v9 = vpop.xlane.xlu0 %427 }
 0x17e   : > { %v431_v10 = vmul.f32 0.0078125, %v428_v9  ;;  %v434_v11 = vmul.f32 %v432_v8, %v432_v8 }
 0x180   : > { %v433_v12 = vsub.f32 %v3273_v1, %v431_v10  ;;  %436 = vadd.xlane.f32.xlu1 %v434_v11 }
 0x182   : > { %v435_v13 = vmul.f32 %v433_v12, %v433_v12 }
 0x184   : > { %438 = vadd.xlane.f32.xlu1 %v435_v13 }
 0x20d   : > { %v437_v27 = vpop.xlane.xlu1 %436 }
 0x20e   : > { %v440_v28 = vmul.f32 0.0078125, %v437_v27 }
 0x210   : > { %v442_v29 = vadd.f32 1e-05, %v440_v28 }
 0x211   : > { %v439_v30 = vpop.xlane.xlu1 %438 }
 0x212   : > { %2554 = vrsqrt.f32 %v442_v29  ;;  %v441_v31 = vmul.f32 0.0078125, %v439_v30  ;;  %v2546_v30 = vld [vmem:[#allocation13] sm:$0xff]  }
 0x214   : > { %v443_v32 = vadd.f32 1e-05, %v441_v31 }
 0x216   : > { %2556 = vrsqrt.f32 %v443_v32 }
 0x21c   : > { %v2555_v33 = vpop.eup %2554 }
 0x21d   : > { %v446_v34 = vmul.f32 %v2555_v33, %v432_v8  ;;  %v780_v8 = vlaneseq }
 0x21f   : > { %v454_v38 = vmul.f32 %v2035_v35, %v446_v34  ;;  %v3334_v9 = vshrl.u32 %v780_v8, 7  ;;  %v3339_v11 = vand.u32 127, %v780_v8 }
 0x220   : > { %v2557_v36 = vpop.eup %2556 }
 0x221   : > { %v447_v37 = vmul.f32 %v2557_v36, %v433_v12  ;;  %v462_v41 = vadd.f32 %v2036_v39, %v454_v38  ;;  %v3337_v10 = vadd.s32 8, %v3334_v9  ;;  %vm785_vm5 = vcmp.gt.s32.totalorder %v3339_v11, %v3334_v9 }
 0x223   : > { %v455_v40 = vmul.f32 %v2035_v35, %v447_v37  ;;  %vm786_vm3 = vcmp.gt.s32.totalorder %v3339_v11, %v3337_v10 }
 0x225   : > { %v463_v42 = vadd.f32 %v2036_v39, %v455_v40 }
 0x227   : > { %v464_v44 = vpack.c.bf16 %v463_v42, %v462_v41 }
 0x229   : > { %2193 = vmatmul.mubr.bf16.vlgmr.msra.gmra.mrb[0].mxu0 %v464_v44  ;;  %2213 = vmatmul.mubr.bf16.vlgmr.msra.gmra.mrb[0].mxu1 %v464_v44 }
 0x22a   : > { %2217 = vmatpush3.bf16.msra.mxu0 %v2538_v43  ;;  %2232 = vmatprep.mubr.msk.bf16.mxu0 %vm2913_vm0, %v2912_v4  ;;  %v2547_v43 = vld [vmem:[#allocation13 + $0x8] sm:$0xff]  }
 0x22b   : > { %2218 = vmatprep.subr.bf16.mxu0 %v2912_v4 }
 0x22e   : > { %2219 = vmatpush3.bf16.msra.mxu0 %v2539_v45 }
 0x22f   : > { %2220 = vmatprep.subr.bf16.mxu0 %v2912_v4 }
 0x232   : > { %2221 = vmatpush3.bf16.msra.mxu0 %v2540_v46 }
 0x233   : > { %2222 = vmatprep.subr.bf16.mxu0 %v2912_v4 }
 0x236   : > { %2223 = vmatpush3.bf16.msra.mxu0 %v2541_v47 }
 0x237   : > { %2224 = vmatprep.subr.bf16.mxu0 %v2912_v4 }
 0x23a   : > { %2225 = vmatpush3.bf16.msra.mxu0 %v2542_v48 }
 0x23b   : > { %2226 = vmatprep.subr.bf16.mxu0 %v2912_v4 }
 0x23e   : > { %2227 = vmatpush3.bf16.msra.mxu0 %v2543_v49 }
 0x23f   : > { %2228 = vmatprep.subr.bf16.mxu0 %v2912_v4 }
 0x242   : > { %2229 = vmatpush3.bf16.msra.mxu0 %v2544_v50 }
 0x243   : > { %2230 = vmatprep.subr.bf16.mxu0 %v2912_v4 }
 0x246   : > { %2231 = vmatpush3.bf16.msra.mxu0 %v2545_v51 }
 0x247   : > { %2272 = vmatprep.subr.bf16.mxu0 %v2912_v4 }
 0x249   : > { %2233 = vmatmul.mubr.bf16.vlgmr.msra.gmra.mrb[4].mxu0 %v464_v44 }
 0x24a   : > { %2276 = vmatprep.mubr.msk.bf16.mxu0 %vm2913_vm0, %v2912_v4  ;;  %2273 = vmatpush3.bf16.msra.mxu0 %v2546_v30  ;;  %v2549_v30 = vld [vmem:[#allocation13 + $0x18] sm:$0xff]  }
 0x24b   : > { %2274 = vmatprep.subr.bf16.mxu0 %v2912_v4 }
 0x24e   : > { %2275 = vmatpush3.bf16.msra.mxu0 %v2547_v43 }
 0x24f   : > { %2294 = vmatprep.subr.bf16.mxu0 %v2912_v4 }
 0x2fc   : > { %v3312_v52 = vpop.f32.mrb[0].mxu0  ;;  %v668_v53 = vpop.f32.mrb[0].mxu1 }
 0x2fd   : > { %v2194_v54 = vpop.f32.mrb[1].mxu0  ;;  %v2214_v55 = vpop.f32.mrb[1].mxu1  ;;  %2240 = vmatprep.mubr.msk.f32.mxu1 %vm787_vm1, %v3312_v52 }
 0x2fe   : > { %v3316_v56 = vpop.f32.mrb[2].mxu0  ;;  %v671_v57 = vpop.f32.mrb[2].mxu1 }
 0x2ff   : > { %v2324_v59 = vpack.c.bf16 %v671_v57, %v668_v53  ;;  %v2195_v60 = vpop.f32.mrb[3].mxu0  ;;  %v2215_v61 = vpop.f32.mrb[3].mxu1  ;;  %v3324_v62 = vpack.i.bf16 %v671_v57, %v668_v53 }
 0x301   : > { %2326 = vmatprep.subr.msk.bf16.mxu1 %vm3320_vm2, %v2324_v59 }
 0x302   : > { %2329 = vmatpush3.bf16.xpose.msk.msra.mxu1 %vm3320_vm2, %v2324_v59 }
 0x309   : > { %2241 = vmatmul.mubr.msk.f32.vlgmr.msra.gmra.mrb[4].mxu1 %vm787_vm1, %v3316_v56 }
 0x31c   : > { %v773_v63 = vpop.f32.mrb[4].mxu0 }
 0x31d   : > { %v2234_v2 = vpop.f32.mrb[5].mxu0 }
 0x31e   : > { %v776_v3 = vpop.f32.mrb[6].mxu0 }
 0x31f   : > { %v2235_v5 = vpop.f32.mrb[7].mxu0  ;;  %v2330_v6 = vpack.c.bf16 %v776_v3, %v773_v63  ;;  %v3332_v7 = vpack.i.bf16 %v776_v3, %v773_v63 }
 0x321   : > { %2331 = vmatprep.subr.bf16.mxu1 %v2330_v6 }
 0x322   : > { %2333 = vmatpush3.bf16.msra.mxu1 %v2330_v6 }
 0x3dc   : > { %v2242_v12 = vpop.f32.mrb[4].mxu1 }
 0x3dd   : > { %v876_v13 = vmul.f32 0.17677669, %v2242_v12  ;;  %v866_v14 = vpop.f32.mrb[5].mxu1 }
 0x3de   : > { %v875_v15 = vmul.f32 0.17677669, %v866_v14 }
 0x3df   : > { %v878_v16 = vsel %vm786_vm3, -1e+30, %v876_v13 }
 0x3e0   : > { %v883_v17 = vsel %vm879_vm4, %v878_v16, -inf  ;;  %v877_v18 = vsel %vm785_vm5, -1e+30, %v875_v15 }
 0x3e1   : > { %884 = vmax.xlane.f32.xlu1 %v883_v17  ;;  %v880_v19 = vsel %vm879_vm4, %v877_v18, -inf }
 0x3e2   : > { %881 = vmax.xlane.f32.xlu0 %v880_v19 }
 0x46e   : > { %v885_v20 = vpop.xlane.xlu1 %884 }
 0x46f   : > { %v887_v21 = vsub.f32 %v878_v16, %v885_v20  ;;  %v882_v22 = vpop.xlane.xlu0 %881 }
 0x470   : > { %v886_v23 = vsub.f32 %v877_v18, %v882_v22 }
 0x471   : > { %v890_v24 = vmul.f32 1.442695, %v887_v21 }
 0x472   : > { %v888_v25 = vmul.f32 1.442695, %v886_v23 }
 0x473   : > { %2558 = vpow2.f32 %v890_v24 }
 0x474   : > { %2560 = vpow2.f32 %v888_v25 }
 0x47d   : > { %v2559_v26 = vpop.eup %2558 }
 0x47e   : > { %v2561_v27 = vpop.eup %2560  ;;  %v895_v28 = vsel %vm879_vm4, %v2559_v26, 0.0 }
 0x47f   : > { %896 = vadd.xlane.f32.xlu1 %v895_v28  ;;  %v892_v29 = vsel %vm879_vm4, %v2561_v27, 0.0 }
 0x480   : > { %893 = vadd.xlane.f32.xlu0 %v892_v29 }
 0x490   : > { %988 = vrot.lane.b32.xlu1 %v3312_v52, %s2914_s12 }
 0x494   : > { %990 = vrot.lane.b32.xlu1 %v3316_v56, %s2914_s12 }
 0x496   : > { %2493 = vrot.lane.b32.xlu0 %v3324_v62, %s2914_s12 }
 0x50c   : > { %v897_v31 = vpop.xlane.xlu1 %896 }
 0x50d   : > { %2562 = vrcp.f32 %v897_v31  ;;  %v894_v32 = vpop.xlane.xlu0 %893 }
 0x50e   : > { %2564 = vrcp.f32 %v894_v32 }
 0x510   : > { %v989_v41 = vpop.permute.xlu1 %988 }
 0x511   : > { %v2494_v33 = vpop.permute.xlu0 %2493 }
 0x512   : > { %v2496_v34 = vunpack.i.h.bf16 %v2494_v33  ;;  %v2495_v35 = vunpack.i.l.bf16 %v2494_v33 }
 0x514   : > { %v2334_v36 = vpack.c.bf16 %v2496_v34, %v2495_v35  ;;  %v991_v42 = vpop.permute.xlu1 %990 }
 0x516   : > { %2336 = vmatprep.subr.msk.bf16.mxu1 %vm3320_vm2, %v2334_v36 }
 0x517   : > { %v2563_v37 = vpop.eup %2562 }
 0x518   : > { %v2565_v38 = vpop.eup %2564  ;;  %v901_v40 = vmul.f32 %v2563_v37, %v2559_v26  ;;  %v2548_v26 = vld [vmem:[#allocation13 + $0x10] sm:$0xff]  }
 0x519   : > { %v899_v39 = vmul.f32 %v2565_v38, %v2561_v27 }
 0x51b   : > { %2247 = vmatprep.mubr.msk.f32.mxu1 %vm879_vm4, %v899_v39 }
 0x51c   : > { %2248 = vmatmul.mubr.msk.f32.vlgmr.msra.gmra.mrb[6].mxu1 %vm879_vm4, %v901_v40 }
 0x51d   : > { %2339 = vmatpush3.bf16.xpose.msk.msra.mxu1 %vm3320_vm2, %v2334_v36  ;;  %2254 = vmatprep.mubr.msk.f32.mxu1 %vm787_vm1, %v989_v41 }
 0x524   : > { %2255 = vmatmul.mubr.msk.f32.vlgmr.msra.gmra.mrb[8].mxu1 %vm787_vm1, %v991_v42 }
 0x5ef   : > { %v2249_v44 = vpop.f32.mrb[6].mxu1 }
 0x5f0   : > { %v974_v45 = vpop.f32.mrb[7].mxu1 }
 0x5f1   : > { %v987_v46 = vpack.c.bf16 %v2249_v44, %v974_v45 }
 0x5f3   : > { %2277 = vmatmul.mubr.msk.bf16.vlgmr.msra.gmra.mrb[8].mxu0 %vm787_vm1, %v987_v46 }
 0x5f4   : > { %2298 = vmatprep.mubr.msk.bf16.mxu0 %vm2913_vm0, %v2912_v4 }
 0x5f7   : > { %v2256_v47 = vpop.f32.mrb[8].mxu1 }
 0x5f8   : > { %v1080_v48 = vmul.f32 0.17677669, %v2256_v47  ;;  %v1070_v49 = vpop.f32.mrb[9].mxu1 }
 0x5f9   : > { %v1079_v50 = vmul.f32 0.17677669, %v1070_v49 }
 0x5fa   : > { %v1082_v51 = vsel %vm786_vm3, -1e+30, %v1080_v48 }
 0x5fb   : > { %v1086_v53 = vsel %vm879_vm4, %v1082_v51, -inf  ;;  %v1081_v54 = vsel %vm785_vm5, -1e+30, %v1079_v50 }
 0x5fc   : > { %1087 = vmax.xlane.f32.xlu0 %v1086_v53  ;;  %v1083_v55 = vsel %vm879_vm4, %v1081_v54, -inf }
 0x5fd   : > { %1084 = vmax.xlane.f32.xlu1 %v1083_v55 }
 0x60e   : > { %2498 = vrot.lane.b32.xlu1 %v3332_v7, %s2914_s12 }
 0x612   : > { %1311 = vrot.lane.b32.xlu1 %v3312_v52, %s2915_s1 }
 0x616   : > { %1313 = vrot.lane.b32.xlu1 %v3316_v56, %s2915_s1 }
 0x689   : > { %v1088_v57 = vpop.xlane.xlu0 %1087 }
 0x68a   : > { %v1090_v59 = vsub.f32 %v1082_v51, %v1088_v57  ;;  %v1085_v60 = vpop.xlane.xlu1 %1084 }
 0x68b   : > { %v1089_v61 = vsub.f32 %v1081_v54, %v1085_v60 }
 0x68c   : > { %v1093_v63 = vmul.f32 1.442695, %v1090_v59 }
 0x68d   : > { %v1091_v2 = vmul.f32 1.442695, %v1089_v61 }
 0x68e   : > { %v2499_v3 = vpop.permute.xlu1 %2498 }
 0x68f   : > { %2566 = vpow2.f32 %v1091_v2  ;;  %v2501_v5 = vunpack.i.h.bf16 %v2499_v3  ;;  %v2500_v6 = vunpack.i.l.bf16 %v2499_v3 }
 0x690   : > { %2568 = vpow2.f32 %v1093_v63 }
 0x691   : > { %v2340_v8 = vpack.c.bf16 %v2501_v5, %v2500_v6  ;;  %v2550_v6 = vld [vmem:[#allocation13 + $0x20] sm:$0xff]  }
 0x692   : > { %v1312_v35 = vpop.permute.xlu1 %1311  ;;  %2295 = vmatpush3.bf16.msra.mxu0 %v2550_v6 }
 0x693   : > { %2341 = vmatprep.subr.bf16.mxu1 %v2340_v8  ;;  %2296 = vmatprep.subr.bf16.mxu0 %v2912_v4 }
 0x694   : > { %2343 = vmatpush3.bf16.msra.mxu1 %v2340_v8  ;;  %v2551_v8 = vld [vmem:[#allocation13 + $0x28] sm:$0xff]  }
 0x695   : > { %2264 = vmatprep.subr.bf16.mxu1 %v2912_v4 }
 0x696   : > { %v1314_v36 = vpop.permute.xlu1 %1313  ;;  %2297 = vmatpush3.bf16.msra.mxu0 %v2551_v8 }
 0x699   : > { %v2567_v12 = vpop.eup %2566 }
 0x69a   : > { %v1095_v13 = vsel %vm879_vm4, %v2567_v12, 0.0  ;;  %v2569_v14 = vpop.eup %2568 }
 0x69b   : > { %1096 = vadd.xlane.f32.xlu0 %v1095_v13  ;;  %v1098_v15 = vsel %vm879_vm4, %v2569_v14, 0.0 }
 0x69f   : > { %1099 = vadd.xlane.f32.xlu0 %v1098_v15 }
 0x6b5   : > { %2503 = vrot.lane.b32.xlu0 %v3324_v62, %s2915_s1 }
 0x6c6   : > { %v1304_v16 = vpop.f32.mrb[8].mxu0 }
 0x6c7   : > { %v2278_v17 = vpop.f32.mrb[9].mxu0 }
 0x6c8   : > { %v1307_v18 = vpop.f32.mrb[10].mxu0 }
 0x6c9   : > { %v2279_v19 = vpop.f32.mrb[11].mxu0 }
 0x728   : > { %v1097_v20 = vpop.xlane.xlu0 %1096 }
 0x729   : > { %2570 = vrcp.f32 %v1097_v20 }
 0x72c   : > { %v1100_v21 = vpop.xlane.xlu0 %1099 }
 0x72d   : > { %2572 = vrcp.f32 %v1100_v21 }
 0x730   : > { %v2504_v25 = vpop.permute.xlu0 %2503 }
 0x731   : > { %v2506_v28 = vunpack.i.h.bf16 %v2504_v25  ;;  %v2505_v29 = vunpack.i.l.bf16 %v2504_v25 }
 0x733   : > { %v2571_v22 = vpop.eup %2570  ;;  %v2344_v31 = vpack.c.bf16 %v2506_v28, %v2505_v29 }
 0x734   : > { %v1102_v23 = vmul.f32 %v2571_v22, %v2567_v12 }
 0x736   : > { %2261 = vmatprep.mubr.msk.f32.mxu1 %vm879_vm4, %v1102_v23 }
 0x737   : > { %v2573_v24 = vpop.eup %2572 }
 0x738   : > { %v1104_v27 = vmul.f32 %v2573_v24, %v2569_v14 }
 0x73a   : > { %2262 = vmatmul.mubr.msk.f32.vlgmr.msra.gmra.mrb[10].mxu1 %vm879_vm4, %v1104_v27 }
 0x73b   : > { %2265 = vmatpush3.bf16.msra.mxu1 %v2548_v26  ;;  %2268 = vmatprep.mubr.msk.bf16.mxu1 %vm2913_vm0, %v2912_v4 }
 0x73c   : > { %2266 = vmatprep.subr.bf16.mxu1 %v2912_v4 }
 0x73f   : > { %2267 = vmatpush3.bf16.msra.mxu1 %v2549_v30 }
 0x740   : > { %2346 = vmatprep.subr.msk.bf16.mxu1 %vm3320_vm2, %v2344_v31 }
 0x80d   : > { %v2263_v32 = vpop.f32.mrb[10].mxu1 }
 0x80e   : > { %v1185_v33 = vpop.f32.mrb[11].mxu1 }
 0x80f   : > { %v1198_v34 = vpack.c.bf16 %v2263_v32, %v1185_v33 }
 0x811   : > { %2269 = vmatmul.mubr.msk.bf16.vlgmr.msra.gmra.mrb[12].mxu1 %vm787_vm1, %v1198_v34 }
 0x812   : > { %2349 = vmatpush3.bf16.xpose.msk.msra.mxu1 %vm3320_vm2, %v2344_v31  ;;  %2284 = vmatprep.mubr.msk.f32.mxu1 %vm787_vm1, %v1312_v35 }
 0x819   : > { %2285 = vmatmul.mubr.msk.f32.vlgmr.msra.gmra.mrb[16].mxu1 %vm787_vm1, %v1314_v36 }
 0x8e4   : > { %v1248_v37 = vpop.f32.mrb[12].mxu1 }
 0x8e5   : > { %v3405_v38 = vadd.f32 %v1304_v16, %v1248_v37  ;;  %v2270_v39 = vpop.f32.mrb[13].mxu1 }
 0x8e6   : > { %v1251_v40 = vpop.f32.mrb[14].mxu1 }
 0x8e7   : > { %v3407_v41 = vadd.f32 %v1307_v18, %v1251_v40  ;;  %v2271_v42 = vpop.f32.mrb[15].mxu1 }
 0x8ec   : > { %v2286_v43 = vpop.f32.mrb[16].mxu1 }
 0x8ed   : > { %v1403_v44 = vmul.f32 0.17677669, %v2286_v43  ;;  %v1393_v45 = vpop.f32.mrb[17].mxu1 }
 0x8ee   : > { %v1402_v46 = vmul.f32 0.17677669, %v1393_v45 }
 0x8ef   : > { %v1405_v47 = vsel %vm786_vm3, -1e+30, %v1403_v44 }
 0x8f0   : > { %v1409_v48 = vsel %vm879_vm4, %v1405_v47, -inf  ;;  %v1404_v49 = vsel %vm785_vm5, -1e+30, %v1402_v46 }
 0x8f1   : > { %1410 = vmax.xlane.f32.xlu0 %v1409_v48  ;;  %v1406_v50 = vsel %vm879_vm4, %v1404_v49, -inf }
 0x8f2   : > { %1407 = vmax.xlane.f32.xlu1 %v1406_v50 }
 0x903   : > { %2508 = vrot.lane.b32.xlu1 %v3332_v7, %s2915_s1 }
 0x907   : > { %1578 = vrot.lane.b32.xlu1 %v3312_v52, %s2916_s18 }
 0x90b   : > { %1580 = vrot.lane.b32.xlu1 %v3316_v56, %s2916_s18 }
 0x97e   : > { %v1411_v51 = vpop.xlane.xlu0 %1410 }
 0x97f   : > { %v1413_v53 = vsub.f32 %v1405_v47, %v1411_v51  ;;  %v1408_v54 = vpop.xlane.xlu1 %1407 }
 0x980   : > { %v1412_v55 = vsub.f32 %v1404_v49, %v1408_v54  ;;  %v2552_v49 = vld [vmem:[#allocation13 + $0x30] sm:$0xff]  }
 0x981   : > { %v1416_v57 = vmul.f32 1.442695, %v1413_v53 }
 0x982   : > { %v1414_v59 = vmul.f32 1.442695, %v1412_v55 }
 0x983   : > { %v2509_v60 = vpop.permute.xlu1 %2508 }
 0x984   : > { %2574 = vpow2.f32 %v1414_v59  ;;  %v2511_v61 = vunpack.i.h.bf16 %v2509_v60  ;;  %v2510_v63 = vunpack.i.l.bf16 %v2509_v60  ;;  %v2553_v59 = vld [vmem:[#allocation13 + $0x38] sm:$0xff]  }
 0x985   : > { %2576 = vpow2.f32 %v1416_v57 }
 0x986   : > { %v2350_v2 = vpack.c.bf16 %v2511_v61, %v2510_v63 }
 0x987   : > { %v1579_v24 = vpop.permute.xlu1 %1578 }
 0x988   : > { %2351 = vmatprep.subr.bf16.mxu1 %v2350_v2 }
 0x989   : > { %2353 = vmatpush3.bf16.msra.mxu1 %v2350_v2 }
 0x98a   : > { %2316 = vmatprep.subr.bf16.mxu1 %v2912_v4 }
 0x98b   : > { %v1581_v25 = vpop.permute.xlu1 %1580 }
 0x98e   : > { %v2575_v52 = vpop.eup %2574 }
 0x98f   : > { %v1418_v3 = vsel %vm879_vm4, %v2575_v52, 0.0  ;;  %v2577_v56 = vpop.eup %2576 }
 0x990   : > { %1419 = vadd.xlane.f32.xlu0 %v1418_v3  ;;  %v1421_v5 = vsel %vm879_vm4, %v2577_v56, 0.0  ;;  %v2097_v3 = vld [vmem:[#allocation14] ss:$0 sm:$0xff] }
 0x994   : > { %1422 = vadd.xlane.f32.xlu0 %v1421_v5 }
 0x9aa   : > { %2513 = vrot.lane.b32.xlu0 %v3324_v62, %s2916_s18 }
 0xa1d   : > { %v1420_v12 = vpop.xlane.xlu0 %1419 }
 0xa1e   : > { %2578 = vrcp.f32 %v1420_v12 }
 0xa21   : > { %v1423_v13 = vpop.xlane.xlu0 %1422 }
 0xa22   : > { %2580 = vrcp.f32 %v1423_v13 }
 0xa25   : > { %v2514_v14 = vpop.permute.xlu0 %2513 }
 0xa26   : > { %v2516_v15 = vunpack.i.h.bf16 %v2514_v14  ;;  %v2515_v16 = vunpack.i.l.bf16 %v2514_v14 }
 0xa28   : > { %v2579_v17 = vpop.eup %2578  ;;  %v2354_v18 = vpack.c.bf16 %v2516_v15, %v2515_v16 }
 0xa29   : > { %v1425_v19 = vmul.f32 %v2579_v17, %v2575_v52 }
 0xa2a   : > { %2356 = vmatprep.subr.msk.bf16.mxu0 %vm3320_vm2, %v2354_v18 }
 0xa2b   : > { %2291 = vmatprep.mubr.msk.f32.mxu1 %vm879_vm4, %v1425_v19 }
 0xa2c   : > { %v2581_v20 = vpop.eup %2580 }
 0xa2d   : > { %v1427_v21 = vmul.f32 %v2581_v20, %v2577_v56 }
 0xa2f   : > { %2292 = vmatmul.mubr.msk.f32.vlgmr.msra.gmra.mrb[18].mxu1 %vm879_vm4, %v1427_v21 }
 0xa30   : > { %2320 = vmatprep.mubr.msk.bf16.mxu1 %vm2913_vm0, %v2912_v4  ;;  %2317 = vmatpush3.bf16.msra.mxu1 %v2552_v49 }
 0xa31   : > { %2318 = vmatprep.subr.bf16.mxu1 %v2912_v4 }
 0xa34   : > { %2319 = vmatpush3.bf16.msra.mxu1 %v2553_v59 }
 0xb02   : > { %v2293_v62 = vpop.f32.mrb[18].mxu1 }
 0xb03   : > { %v1506_v22 = vpop.f32.mrb[19].mxu1 }
 0xb04   : > { %v1519_v23 = vpack.c.bf16 %v2293_v62, %v1506_v22 }
 0xb06   : > { %2299 = vmatmul.mubr.msk.bf16.vlgmr.msra.gmra.mrb[12].mxu0 %vm787_vm1, %v1519_v23 }
 0xb07   : > { %2359 = vmatpush3.bf16.xpose.msk.msra.mxu0 %vm3320_vm2, %v2354_v18  ;;  %2306 = vmatprep.mubr.msk.f32.mxu0 %vm787_vm1, %v1579_v24 }
 0xb0e   : > { %2307 = vmatmul.mubr.msk.f32.vlgmr.msra.gmra.mrb[16].mxu0 %vm787_vm1, %v1581_v25 }
 0xbd9   : > { %v1569_v26 = vpop.f32.mrb[12].mxu0 }
 0xbda   : > { %v1576_v27 = vadd.f32 %v1569_v26, %v3405_v38  ;;  %v2300_v28 = vpop.f32.mrb[13].mxu0 }
 0xbdb   : > { %v1572_v29 = vpop.f32.mrb[14].mxu0 }
 0xbdc   : > { %v1577_v30 = vadd.f32 %v1572_v29, %v3407_v41  ;;  %v2301_v31 = vpop.f32.mrb[15].mxu0 }
 0xbe1   : > { %v2308_v32 = vpop.f32.mrb[16].mxu0 }
 0xbe2   : > { %v1670_v33 = vmul.f32 0.17677669, %v2308_v32  ;;  %v1660_v34 = vpop.f32.mrb[17].mxu0 }
 0xbe3   : > { %v1669_v35 = vmul.f32 0.17677669, %v1660_v34 }
 0xbe4   : > { %v1672_v58 = vsel %vm786_vm3, -1e+30, %v1670_v33 }
 0xbe5   : > { %v1676_v36 = vsel %vm879_vm4, %v1672_v58, -inf  ;;  %v1671_v37 = vsel %vm785_vm5, -1e+30, %v1669_v35 }
 0xbe6   : > { %1677 = vmax.xlane.f32.xlu0 %v1676_v36  ;;  %v1673_v38 = vsel %vm879_vm4, %v1671_v37, -inf }
 0xbe7   : > { %1674 = vmax.xlane.f32.xlu1 %v1673_v38 }
 0xbf8   : > { %2518 = vrot.lane.b32.xlu1 %v3332_v7, %s2916_s18 }
 0xc73   : > { %v1678_v39 = vpop.xlane.xlu0 %1677 }
 0xc74   : > { %v1680_v40 = vsub.f32 %v1672_v58, %v1678_v39  ;;  %v1675_v41 = vpop.xlane.xlu1 %1674 }
 0xc75   : > { %v1679_v42 = vsub.f32 %v1671_v37, %v1675_v41 }
 0xc76   : > { %v1683_v43 = vmul.f32 1.442695, %v1680_v40 }
 0xc77   : > { %v1681_v10 = vmul.f32 1.442695, %v1679_v42 }
 0xc78   : > { %v2519_v44 = vpop.permute.xlu1 %2518 }
 0xc79   : > { %2582 = vpow2.f32 %v1681_v10  ;;  %v2521_v45 = vunpack.i.h.bf16 %v2519_v44  ;;  %v2520_v46 = vunpack.i.l.bf16 %v2519_v44 }
 0xc7a   : > { %2584 = vpow2.f32 %v1683_v43 }
 0xc7b   : > { %v2360_v9 = vpack.c.bf16 %v2521_v45, %v2520_v46 }
 0xc7d   : > { %2361 = vmatprep.subr.bf16.mxu0 %v2360_v9 }
 0xc7e   : > { %2363 = vmatpush3.bf16.msra.mxu0 %v2360_v9 }
 0xc83   : > { %v2583_v11 = vpop.eup %2582 }
 0xc84   : > { %v1685_v47 = vsel %vm879_vm4, %v2583_v11, 0.0  ;;  %v2585_v48 = vpop.eup %2584 }
 0xc85   : > { %1686 = vadd.xlane.f32.xlu0 %v1685_v47  ;;  %v1688_v7 = vsel %vm879_vm4, %v2585_v48, 0.0 }
 0xc89   : > { %1689 = vadd.xlane.f32.xlu0 %v1688_v7 }
 0xd12   : > { %v1687_v50 = vpop.xlane.xlu0 %1686 }
 0xd13   : > { %2586 = vrcp.f32 %v1687_v50 }
 0xd16   : > { %v1690_v51 = vpop.xlane.xlu0 %1689 }
 0xd17   : > { %2588 = vrcp.f32 %v1690_v51 }
 0xd1d   : > { %v2587_v53 = vpop.eup %2586 }
 0xd1e   : > { %v1692_v54 = vmul.f32 %v2587_v53, %v2583_v11 }
 0xd20   : > { %2313 = vmatprep.mubr.msk.f32.mxu0 %vm879_vm4, %v1692_v54 }
 0xd21   : > { %v2589_v55 = vpop.eup %2588 }
 0xd22   : > { %v1694_v57 = vmul.f32 %v2589_v55, %v2585_v48 }
 0xd24   : > { %2314 = vmatmul.mubr.msk.f32.vlgmr.msra.gmra.mrb[18].mxu0 %vm879_vm4, %v1694_v57 }
 0xdf7   : > { %v2315_v60 = vpop.f32.mrb[18].mxu0 }
 0xdf8   : > { %v1773_v61 = vpop.f32.mrb[19].mxu0 }
 0xdf9   : > { %v1786_v63 = vpack.c.bf16 %v2315_v60, %v1773_v61 }
 0xdfb   : > { %2321 = vmatmul.mubr.msk.bf16.vlgmr.msra.gmra.mrb[20].mxu1 %vm787_vm1, %v1786_v63 }
 0xece   : > { %v1836_v4 = vpop.f32.mrb[20].mxu1 }
 0xecf   : > { %v1843_v2 = vadd.f32 %v1836_v4, %v1576_v27  ;;  %v2322_v52 = vpop.f32.mrb[21].mxu1 }
 0xed0   : > { %v1839_v56 = vpop.f32.mrb[22].mxu1 }
 0xed1   : > { %v1845_v5 = vadd.f32 %v1843_v2, %v3271_v0  ;;  %v1844_v6 = vadd.f32 %v1839_v56, %v1577_v30  ;;  %v2323_v8 = vpop.f32.mrb[23].mxu1 }
 0xed3   : > { %v1854_v12 = vadd.f32 %v2097_v3, %v1845_v5  ;;  %v1846_v13 = vadd.f32 %v1844_v6, %v3273_v1 }
 0xed5   : > { %1856 = vst [vmem:[%s419_s9] sm:$0xff] %v1854_v12  ;;  %v1855_v14 = vadd.f32 %v2097_v3, %v1846_v13 }
 0xed7   : > { %1857 = vst [vmem:[%s419_s9 + $0x8] sm:$0xff] %v1855_v14 }
 0xed8   : > { %2829 = shalt.err (!%p2826_p11)
}
 0xed9   : > { %s2830_s12 = scalar_lea.hbm %s3468_s20, 256  ;;  %s2834_s9 = scalar_lea.hbm %s3520_s8, 512 }
 0xeda   : > { %p2831_p12 = scmp.ne.s32.totalorder %s3468_s20, %s2830_s12  ;;  %p2835_p9 = scmp.lt.u32.totalorder %s3468_s20, %s3520_s8 }
 0xedb   : > { %p2836_p7 = scmp.lt.u32.totalorder %s2834_s9, %s2830_s12  ;;  %p2838_p4 = scmp.lt.u32.totalorder %s2830_s12, %s3468_s20 }
 0xedc   : > { %p2832_p0 = pnand %p2831_p12, %p3545_p13 }
 0xedd   : > { %p2837_p10 = por %p2836_p7, %p2835_p9 }
 0xede   : > { %p2833_p5 = pneg %p2832_p0 }
 0xedf   : > { %p2839_p1 = por %p2838_p4, %p2837_p10 }
 0xee1   : > { %p2840_p3 = pnand %p2839_p1, %p2833_p5 }
 0xee3   : > { %2843 = shalt.err (!%p2840_p3)
}
 0xee4   : > { %s2918_s25 = smov 128   ;;  %s2919_s17 = smov 8  }
 0xee5   : > { %2394 = dma.vmem_to_hbm [thread:$0]  (%p3545_p13), %s3462_s19, 256, %s3468_s20, %s1859_s14, %s2918_s25, %s2918_s25, %s2919_s17  }
 0xee6 PF: > { %s1887_s11 = sand.u32 1, %s2886_s27   ;;  %p3546_p2 = scmp.ne.s32.totalorder %s3532_s24, 0 }
 0xee7   : > { %p3547_p8 = scmp.ge.s32.totalorder %s2898_s30, 2  ;;  %s1888_s22 = scalar_lea.sflag [#allocation4], %s1887_s11 }
 0xee9   : > { %p2423_p6 = pnand %p3547_p8, %p3546_p2 }
 0xeeb   : > { %2881 = dma.done.wait (!%p2423_p6), %s1888_s22, 256  }
 0xeec   : > { %2883 = vsyncadd (!%p2423_p6), %s1888_s22, 4294967040  ;;  %p25_p11 = scmp.ge.s32.totalorder %s3172_s15, 4   ;;  %s3548_s27 = smov %s2890_s28 }
 0xeed   : > { %s3549_s28 = smov %s2894_s29  ;;  %s3550_s29 = smov %s3184_s16 }
 0xeee   : > { %s3551_s30 = smov %s3172_s15  ;;  %27 = sbr.rel (!%p25_p11) target bundleno = 11 (0xb), region = 125 }
 0xef5   :  { %1893 = vsyncpa [#allocation3], 1 }
 0xef6   :  { %1895 = vsyncpa [#allocation3 + $0x1], 1 }
 0xef7   :  { %1896 = vsyncpa [#allocation6], 1 }
 0xef8   :  { %1897 = vsyncpa [#allocation9], 1 }
 0xef9   :  { %1898 = vsyncpa [#allocation12], 1 }
 0xefa   :  { %1899 = vsyncpa [#allocation15], 1 }
 0xefb   :  { %1900 = vsyncpa [#allocation4], 1 }
 0xefc   :  { %1902 = vsyncpa [#allocation4 + $0x1], 1 }

</bundles_post_ra>
